<compile_context>
chip_gen: v7x
topology: tpu7x:2x2x1
jax: 0.10.0
libtpu: 0.0.40
codegen_flags: <defaults>
</compile_context>

<pallas_src>
import jax
import jax.numpy as jnp
from jax import lax
from jax.experimental import pallas as pl
from jax.experimental.pallas import tpu as pltpu

# ----------------------------- model dims -----------------------------------
VOCAB = {'<pad>': 0, 'the': 1, 'cat': 2, 'sat': 3, 'on': 4, 'mat': 5,
         'dog': 6, 'slept': 7, 'rug': 8, 'bird': 9, 'flew': 10, 'away': 11}
VOCAB_SIZE = len(VOCAB)      # 12
EMBED_DIM = 10
HIDDEN_DIM = 12

LANE = 128                   # TPU lane width; all padded feature dims = 1 lane group
# Matmul OPERANDS only; accumulation is f32 (preferred_element_type) and all
# gate / carry elementwise math is f32 (v5e has no bf16 VPU/EUP).
MATMUL_DTYPE = jnp.bfloat16


def _round_up(x, m):
    return (x + m - 1) // m * m


# ----------------------------- Pallas kernel --------------------------------
def _make_lstm_kernel(T, B):
    """Kernel closure over static (T, B).

    Ref shapes (all lane-padded; gate k occupies lanes [k*Hp, k*Hp+H)):
      ids_ref : (T*B, 1)      int32 token ids, time-major (row = t*B + b)
      emb_ref : (Vtab_p, Ep)  bf16 embedding table (zero-padded rows/cols)
      wih_ref : (Ep, 4*Hp)    bf16
      whh_ref : (Hp, 4*Hp)    bf16
      b_ref   : (1, 4*Hp)     f32
      wl_ref  : (Hp, Vp)      bf16
      bl_ref  : (1, Vp)       f32
      out_ref : (T*B, Vp)     f32 logits (single lane-dense store)
    """

    def kernel(ids_ref, emb_ref, wih_ref, whh_ref, b_ref, wl_ref, bl_ref,
               out_ref):
        TB = T * B
        Vtab_p = emb_ref.shape[0]
        Hp = whh_ref.shape[0]

        # (0) In-kernel embedding lookup as a one-hot MXU matmul (exact row
        # selection; padded table rows are zero and never selected).
        ids = ids_ref[...]                                            # (TB, 1)
        lanes = lax.broadcasted_iota(jnp.int32, (TB, Vtab_p), 1)
        onehot = jnp.where(lanes == ids, 1.0, 0.0).astype(MATMUL_DTYPE)
        x = jnp.dot(onehot, emb_ref[...],
                    preferred_element_type=jnp.float32)               # (TB, Ep)

        # (1) Hoisted input projection: one batched MXU call + one bias add.
        xw = (jnp.dot(x.astype(MATMUL_DTYPE), wih_ref[...],
                      preferred_element_type=jnp.float32)
              + b_ref[...])                                           # (TB, 4Hp)

        h = jnp.zeros((B, Hp), jnp.float32)
        c = jnp.zeros((B, Hp), jnp.float32)
        hs_steps = []

        # (2) Recurrence, fully unrolled (T static & tiny).  Only h @ W_hh is
        # on the serial path; all slices are static, lane-aligned vreg slices;
        # h_t stays a value (no VMEM scratch round-trip).
        for t in range(T):
            hw = jnp.dot(h.astype(MATMUL_DTYPE), whh_ref[...],
                         preferred_element_type=jnp.float32)          # (B, 4Hp)
            gates = xw[t * B:(t + 1) * B, :] + hw
            i = jax.nn.sigmoid(gates[:, 0 * Hp:1 * Hp])
            f = jax.nn.sigmoid(gates[:, 1 * Hp:2 * Hp])
            g = jnp.tanh(gates[:, 2 * Hp:3 * Hp])
            o = jax.nn.sigmoid(gates[:, 3 * Hp:4 * Hp])
            c = f * c + i * g
            h = o * jnp.tanh(c)
            hs_steps.append(h)

        # (3) Hoisted output projection: one matmul + one lane-dense store.
        hs = jnp.concatenate(hs_steps, axis=0).astype(MATMUL_DTYPE)   # (TB, Hp)
        out_ref[...] = (jnp.dot(hs, wl_ref[...],
                                preferred_element_type=jnp.float32)
                        + bl_ref[...])

    return kernel


# ----------------------------- param padding --------------------------------
def pad_params(params):
    """Zero-pad params to lane-aligned, gate-aligned layout (done once)."""
    emb, w_ih, w_hh, b, w_lin, b_lin = params
    Vtab, E = emb.shape
    H = w_hh.shape[0]
    V = w_lin.shape[1]
    Ep, Hp, Vp = _round_up(E, LANE), _round_up(H, LANE), _round_up(V, LANE)
    Vtab_p = _round_up(Vtab, LANE)      # one-hot lane width == table rows

    emb_p = jnp.zeros((Vtab_p, Ep), jnp.float32).at[:Vtab, :E].set(emb)
    w_ih_p = jnp.zeros((Ep, 4 * Hp), jnp.float32)
    w_hh_p = jnp.zeros((Hp, 4 * Hp), jnp.float32)
    b_p = jnp.zeros((1, 4 * Hp), jnp.float32)
    for k in range(4):                  # gate k -> lanes [k*Hp, k*Hp+H)
        w_ih_p = w_ih_p.at[:E, k * Hp:k * Hp + H].set(w_ih[:, k * H:(k + 1) * H])
        w_hh_p = w_hh_p.at[:H, k * Hp:k * Hp + H].set(w_hh[:, k * H:(k + 1) * H])
        b_p = b_p.at[:, k * Hp:k * Hp + H].set(b[:, k * H:(k + 1) * H])
    w_lin_p = jnp.zeros((Hp, Vp), jnp.float32).at[:H, :V].set(w_lin)
    b_lin_p = jnp.zeros((1, Vp), jnp.float32).at[:, :V].set(b_lin)

    return (emb_p.astype(MATMUL_DTYPE),
            w_ih_p.astype(MATMUL_DTYPE),
            w_hh_p.astype(MATMUL_DTYPE),
            b_p,
            w_lin_p.astype(MATMUL_DTYPE),
            b_lin_p,
            (E, H, V, Ep, Hp, Vp, Vtab_p))


# ----------------------------- wrapper ---------------------------------------
def next_word_predictor(token_ids, params):
    """token_ids: (B, T) int32 -> logits (B, T, V) f32."""
    emb_p, w_ih_p, w_hh_p, b_p, w_lin_p, b_lin_p, dims = pad_params(params)
    _, _, V, Ep, Hp, Vp, Vtab_p = dims
    B, T = token_ids.shape
    TB = T * B

    # Token ids in time-major flat order (row = t*B + b); the embedding gather
    # itself happens inside the kernel.
    ids_tm = jnp.transpose(token_ids).reshape(TB, 1).astype(jnp.int32)

    out = pl.pallas_call(
        _make_lstm_kernel(T, B),
        out_shape=jax.ShapeDtypeStruct((TB, Vp), jnp.float32),
        grid=(1,),
        in_specs=[
            pl.BlockSpec((TB, 1), lambda i: (0, 0)),
            pl.BlockSpec((Vtab_p, Ep), lambda i: (0, 0)),
            pl.BlockSpec((Ep, 4 * Hp), lambda i: (0, 0)),
            pl.BlockSpec((Hp, 4 * Hp), lambda i: (0, 0)),
            pl.BlockSpec((1, 4 * Hp), lambda i: (0, 0)),
            pl.BlockSpec((Hp, Vp), lambda i: (0, 0)),
            pl.BlockSpec((1, Vp), lambda i: (0, 0)),
        ],
        out_specs=pl.BlockSpec((TB, Vp), lambda i: (0, 0)),
        compiler_params=pltpu.CompilerParams(
            dimension_semantics=("arbitrary",)),
    )(ids_tm, emb_p, w_ih_p, w_hh_p, b_p, w_lin_p, b_lin_p)

    # (T*B, Vp) -> (B, T, V).  Tiny XLA-side relayout + slice of padded lanes.
    # TODO(synk): at scale, emit time-major logits directly to the consumer
    # instead of this extra HBM read+write.
    return jnp.transpose(out.reshape(T, B, Vp), (1, 0, 2))[..., :V]


# ----------------------------- pure JAX reference ----------------------------
def reference_forward(token_ids, params, matmul_dtype=jnp.float32):
    """Reference LSTM; matmul operands cast to `matmul_dtype`, accum in f32."""
    emb_table, w_ih, w_hh, b, w_lin, b_lin = params
    md = matmul_dtype
    emb_q = emb_table.astype(md).astype(jnp.float32)
    embeds = jnp.take(emb_q, token_ids, axis=0)                   # (B, T, E)
    B, T, _ = embeds.shape
    H = w_hh.shape[0]
    w_ih_q, w_hh_q, w_lin_q = (w_ih.astype(md), w_hh.astype(md),
                               w_lin.astype(md))

    def step(carry, x_t):
        h, c = carry
        gates = (jnp.dot(x_t.astype(md), w_ih_q,
                         preferred_element_type=jnp.float32)
                 + jnp.dot(h.astype(md), w_hh_q,
                           preferred_element_type=jnp.float32)
                 + b[0])
        i = jax.nn.sigmoid(gates[:, 0 * H:1 * H])
        f = jax.nn.sigmoid(gates[:, 1 * H:2 * H])
        g = jnp.tanh(gates[:, 2 * H:3 * H])
        o = jax.nn.sigmoid(gates[:, 3 * H:4 * H])
        c_new = f * c + i * g
        h_new = o * jnp.tanh(c_new)
        return (h_new, c_new), h_new

    h0 = jnp.zeros((B, H), jnp.float32)
    c0 = jnp.zeros((B, H), jnp.float32)
    _, hs = lax.scan(step, (h0, c0), jnp.transpose(embeds, (1, 0, 2)))
    hs = jnp.transpose(hs, (1, 0, 2))                             # (B, T, H)
    return (jnp.dot(hs.astype(md), w_lin_q,
                    preferred_element_type=jnp.float32) + b_lin[0])


# ----------------------------- params ----------------------------------------
def init_params(key, vocab_size, embed_dim, hidden_dim):
    k = jax.random.split(key, 6)
    s = 1.0 / jnp.sqrt(hidden_dim)
    emb_table = jax.random.normal(k[0], (vocab_size, embed_dim), jnp.float32)
    w_ih = jax.random.uniform(k[1], (embed_dim, 4 * hidden_dim), jnp.float32,
                              -s, s)
    w_hh = jax.random.uniform(k[2], (hidden_dim, 4 * hidden_dim), jnp.float32,
                              -s, s)
    b = jax.random.uniform(k[3], (1, 4 * hidden_dim), jnp.float32, -2 * s,
                           2 * s)  # bias_ih + bias_hh combined
    w_lin = jax.random.uniform(k[4], (hidden_dim, vocab_size), jnp.float32,
                               -s, s)
    b_lin = jax.random.uniform(k[5], (1, vocab_size), jnp.float32, -s, s)
    return (emb_table, w_ih, w_hh, b, w_lin, b_lin)


# ----------------------------- main -------------------------------------------
if __name__ == "__main__":
    key = jax.random.PRNGKey(0)
    pkey, xkey = jax.random.split(key)

    params = init_params(pkey, VOCAB_SIZE, EMBED_DIM, HIDDEN_DIM)

    # B=8 fills every vreg sublane group / MXU M-row (perf review); T=8.
    B, T = 8, 8
    token_ids = jax.random.randint(xkey, (B, T), 0, VOCAB_SIZE,
                                   dtype=jnp.int32)

    logits = next_word_predictor(token_ids, params)
    logits = jax.block_until_ready(logits)

    assert logits.shape == (B, T, VOCAB_SIZE)

    # Tight check vs a bf16-operand-matched reference (same matmul rounding).
    ref_bf16 = reference_forward(token_ids, params, matmul_dtype=MATMUL_DTYPE)
    err = float(jnp.max(jnp.abs(logits - ref_bf16)))
    assert jnp.allclose(logits, ref_bf16, atol=2e-3, rtol=2e-3), err

    # Loose sanity check vs the exact f32 reference (bf16 rounding only).
    ref_f32 = reference_forward(token_ids, params, matmul_dtype=jnp.float32)
    assert jnp.allclose(logits, ref_f32, atol=1e-1, rtol=1e-1), \
        float(jnp.max(jnp.abs(logits - ref_f32)))

    print("KERNEL_OK")
</pallas_src>

<mosaic_0001>
module attributes {stable_mosaic.version = 11 : i64} {
  func.func @kernel(%arg0: i32, %arg1: memref<64x1xi32, #tpu.memory_space<vmem>>, %arg2: memref<128x128xbf16, #tpu.memory_space<vmem>>, %arg3: memref<128x512xbf16, #tpu.memory_space<vmem>>, %arg4: memref<128x512xbf16, #tpu.memory_space<vmem>>, %arg5: memref<1x512xf32, #tpu.memory_space<vmem>>, %arg6: memref<128x128xbf16, #tpu.memory_space<vmem>>, %arg7: memref<1x128xf32, #tpu.memory_space<vmem>>, %arg8: memref<64x128xf32, #tpu.memory_space<vmem>>) attributes {dimension_semantics = [#tpu.dimension_semantics<arbitrary>], iteration_bounds = array<i64: 1>, scalar_prefetch = 0 : i64, scratch_operands = 0 : i64, tpu.core_type = #tpu.core_type<tc>, window_params = [{pipeline_mode = #tpu.pipeline_mode<synchronous>, transform_indices = @transform_0, window_bounds = array<i64: 64, 1>}, {pipeline_mode = #tpu.pipeline_mode<synchronous>, transform_indices = @transform_1, window_bounds = array<i64: 128, 128>}, {pipeline_mode = #tpu.pipeline_mode<synchronous>, transform_indices = @transform_2, window_bounds = array<i64: 128, 512>}, {pipeline_mode = #tpu.pipeline_mode<synchronous>, transform_indices = @transform_3, window_bounds = array<i64: 128, 512>}, {pipeline_mode = #tpu.pipeline_mode<synchronous>, transform_indices = @transform_4, window_bounds = array<i64: 1, 512>}, {pipeline_mode = #tpu.pipeline_mode<synchronous>, transform_indices = @transform_5, window_bounds = array<i64: 128, 128>}, {pipeline_mode = #tpu.pipeline_mode<synchronous>, transform_indices = @transform_6, window_bounds = array<i64: 1, 128>}, {pipeline_mode = #tpu.pipeline_mode<synchronous>, transform_indices = @transform_7, window_bounds = array<i64: 64, 128>}]} {
    %c0 = arith.constant 0 : index
    %c0_0 = arith.constant 0 : index
    %0 = vector.load %arg1[%c0, %c0_0] : memref<64x1xi32, #tpu.memory_space<vmem>>, vector<64x1xi32>
    %1 = tpu.iota {dimensions = array<i32: 1>} : vector<64x128xi32>
    %2 = vector.broadcast %0 : vector<64x1xi32> to vector<64x128xi32>
    %3 = arith.cmpi eq, %1, %2 : vector<64x128xi32>
    %cst = arith.constant 1.000000e+00 : f32
    %cst_1 = arith.constant 0.000000e+00 : f32
    %4 = vector.broadcast %cst : f32 to vector<64x128xf32>
    %5 = vector.broadcast %cst_1 : f32 to vector<64x128xf32>
    %6 = arith.select %3, %4, %5 : vector<64x128xi1>, vector<64x128xf32>
    %7 = arith.truncf %6 : vector<64x128xf32> to vector<64x128xbf16>
    %c0_2 = arith.constant 0 : index
    %c0_3 = arith.constant 0 : index
    %8 = vector.load %arg2[%c0_2, %c0_3] : memref<128x128xbf16, #tpu.memory_space<vmem>>, vector<128x128xbf16>
    %cst_4 = arith.constant dense<0.000000e+00> : vector<64x128xf32>
    %9 = tpu.matmul %7, %8, %cst_4 {dimension_numbers = #tpu.dot_dimension_numbers<[1], [0], [0], [1], [0, 0, 1, 1], [], []>} : vector<64x128xbf16>, vector<128x128xbf16>, vector<64x128xf32> -> vector<64x128xf32>
    %10 = arith.truncf %9 : vector<64x128xf32> to vector<64x128xbf16>
    %c0_5 = arith.constant 0 : index
    %c0_6 = arith.constant 0 : index
    %11 = vector.load %arg3[%c0_5, %c0_6] : memref<128x512xbf16, #tpu.memory_space<vmem>>, vector<128x512xbf16>
    %cst_7 = arith.constant dense<0.000000e+00> : vector<64x512xf32>
    %12 = tpu.matmul %10, %11, %cst_7 {dimension_numbers = #tpu.dot_dimension_numbers<[1], [0], [0], [1], [0, 0, 1, 1], [], []>} : vector<64x128xbf16>, vector<128x512xbf16>, vector<64x512xf32> -> vector<64x512xf32>
    %c0_8 = arith.constant 0 : index
    %c0_9 = arith.constant 0 : index
    %13 = vector.load %arg5[%c0_8, %c0_9] : memref<1x512xf32, #tpu.memory_space<vmem>>, vector<1x512xf32>
    %14 = vector.broadcast %13 : vector<1x512xf32> to vector<64x512xf32>
    %15 = arith.addf %12, %14 : vector<64x512xf32>
    %cst_10 = arith.constant 0.000000e+00 : f32
    %16 = vector.broadcast %cst_10 : f32 to vector<8x128xf32>
    %cst_11 = arith.constant 0.000000e+00 : f32
    %17 = vector.broadcast %cst_11 : f32 to vector<8x128xf32>
    %18 = arith.truncf %16 : vector<8x128xf32> to vector<8x128xbf16>
    %c0_12 = arith.constant 0 : index
    %c0_13 = arith.constant 0 : index
    %19 = vector.load %arg4[%c0_12, %c0_13] : memref<128x512xbf16, #tpu.memory_space<vmem>>, vector<128x512xbf16>
    %cst_14 = arith.constant dense<0.000000e+00> : vector<8x512xf32>
    %20 = tpu.matmul %18, %19, %cst_14 {dimension_numbers = #tpu.dot_dimension_numbers<[1], [0], [0], [1], [0, 0, 1, 1], [], []>} : vector<8x128xbf16>, vector<128x512xbf16>, vector<8x512xf32> -> vector<8x512xf32>
    %21 = vector.extract_strided_slice %15 {offsets = [0, 0], sizes = [8, 512], strides = [1, 1]} : vector<64x512xf32> to vector<8x512xf32>
    %22 = arith.addf %21, %20 : vector<8x512xf32>
    %23 = vector.extract_strided_slice %22 {offsets = [0, 0], sizes = [8, 128], strides = [1, 1]} : vector<8x512xf32> to vector<8x128xf32>
    %24 = arith.negf %23 : vector<8x128xf32>
    %25 = math.exp %24 : vector<8x128xf32>
    %cst_15 = arith.constant 1.000000e+00 : f32
    %26 = vector.broadcast %cst_15 : f32 to vector<8x128xf32>
    %27 = arith.addf %26, %25 : vector<8x128xf32>
    %28 = arith.divf %26, %27 : vector<8x128xf32>
    %29 = vector.extract_strided_slice %22 {offsets = [0, 128], sizes = [8, 128], strides = [1, 1]} : vector<8x512xf32> to vector<8x128xf32>
    %30 = arith.negf %29 : vector<8x128xf32>
    %31 = math.exp %30 : vector<8x128xf32>
    %cst_16 = arith.constant 1.000000e+00 : f32
    %32 = vector.broadcast %cst_16 : f32 to vector<8x128xf32>
    %33 = arith.addf %32, %31 : vector<8x128xf32>
    %34 = arith.divf %32, %33 : vector<8x128xf32>
    %35 = vector.extract_strided_slice %22 {offsets = [0, 256], sizes = [8, 128], strides = [1, 1]} : vector<8x512xf32> to vector<8x128xf32>
    %36 = math.tanh %35 : vector<8x128xf32>
    %37 = vector.extract_strided_slice %22 {offsets = [0, 384], sizes = [8, 128], strides = [1, 1]} : vector<8x512xf32> to vector<8x128xf32>
    %38 = arith.negf %37 : vector<8x128xf32>
    %39 = math.exp %38 : vector<8x128xf32>
    %cst_17 = arith.constant 1.000000e+00 : f32
    %40 = vector.broadcast %cst_17 : f32 to vector<8x128xf32>
    %41 = arith.addf %40, %39 : vector<8x128xf32>
    %42 = arith.divf %40, %41 : vector<8x128xf32>
    %43 = arith.mulf %34, %17 : vector<8x128xf32>
    %44 = arith.mulf %28, %36 : vector<8x128xf32>
    %45 = arith.addf %43, %44 : vector<8x128xf32>
    %46 = math.tanh %45 : vector<8x128xf32>
    %47 = arith.mulf %42, %46 : vector<8x128xf32>
    %48 = arith.truncf %47 : vector<8x128xf32> to vector<8x128xbf16>
    %c0_18 = arith.constant 0 : index
    %c0_19 = arith.constant 0 : index
    %49 = vector.load %arg4[%c0_18, %c0_19] : memref<128x512xbf16, #tpu.memory_space<vmem>>, vector<128x512xbf16>
    %cst_20 = arith.constant dense<0.000000e+00> : vector<8x512xf32>
    %50 = tpu.matmul %48, %49, %cst_20 {dimension_numbers = #tpu.dot_dimension_numbers<[1], [0], [0], [1], [0, 0, 1, 1], [], []>} : vector<8x128xbf16>, vector<128x512xbf16>, vector<8x512xf32> -> vector<8x512xf32>
    %51 = vector.extract_strided_slice %15 {offsets = [8, 0], sizes = [8, 512], strides = [1, 1]} : vector<64x512xf32> to vector<8x512xf32>
    %52 = arith.addf %51, %50 : vector<8x512xf32>
    %53 = vector.extract_strided_slice %52 {offsets = [0, 0], sizes = [8, 128], strides = [1, 1]} : vector<8x512xf32> to vector<8x128xf32>
    %54 = arith.negf %53 : vector<8x128xf32>
    %55 = math.exp %54 : vector<8x128xf32>
    %cst_21 = arith.constant 1.000000e+00 : f32
    %56 = vector.broadcast %cst_21 : f32 to vector<8x128xf32>
    %57 = arith.addf %56, %55 : vector<8x128xf32>
    %58 = arith.divf %56, %57 : vector<8x128xf32>
    %59 = vector.extract_strided_slice %52 {offsets = [0, 128], sizes = [8, 128], strides = [1, 1]} : vector<8x512xf32> to vector<8x128xf32>
    %60 = arith.negf %59 : vector<8x128xf32>
    %61 = math.exp %60 : vector<8x128xf32>
    %cst_22 = arith.constant 1.000000e+00 : f32
    %62 = vector.broadcast %cst_22 : f32 to vector<8x128xf32>
    %63 = arith.addf %62, %61 : vector<8x128xf32>
    %64 = arith.divf %62, %63 : vector<8x128xf32>
    %65 = vector.extract_strided_slice %52 {offsets = [0, 256], sizes = [8, 128], strides = [1, 1]} : vector<8x512xf32> to vector<8x128xf32>
    %66 = math.tanh %65 : vector<8x128xf32>
    %67 = vector.extract_strided_slice %52 {offsets = [0, 384], sizes = [8, 128], strides = [1, 1]} : vector<8x512xf32> to vector<8x128xf32>
    %68 = arith.negf %67 : vector<8x128xf32>
    %69 = math.exp %68 : vector<8x128xf32>
    %cst_23 = arith.constant 1.000000e+00 : f32
    %70 = vector.broadcast %cst_23 : f32 to vector<8x128xf32>
    %71 = arith.addf %70, %69 : vector<8x128xf32>
    %72 = arith.divf %70, %71 : vector<8x128xf32>
    %73 = arith.mulf %64, %45 : vector<8x128xf32>
    %74 = arith.mulf %58, %66 : vector<8x128xf32>
    %75 = arith.addf %73, %74 : vector<8x128xf32>
    %76 = math.tanh %75 : vector<8x128xf32>
    %77 = arith.mulf %72, %76 : vector<8x128xf32>
    %78 = arith.truncf %77 : vector<8x128xf32> to vector<8x128xbf16>
    %c0_24 = arith.constant 0 : index
    %c0_25 = arith.constant 0 : index
    %79 = vector.load %arg4[%c0_24, %c0_25] : memref<128x512xbf16, #tpu.memory_space<vmem>>, vector<128x512xbf16>
    %cst_26 = arith.constant dense<0.000000e+00> : vector<8x512xf32>
    %80 = tpu.matmul %78, %79, %cst_26 {dimension_numbers = #tpu.dot_dimension_numbers<[1], [0], [0], [1], [0, 0, 1, 1], [], []>} : vector<8x128xbf16>, vector<128x512xbf16>, vector<8x512xf32> -> vector<8x512xf32>
    %81 = vector.extract_strided_slice %15 {offsets = [16, 0], sizes = [8, 512], strides = [1, 1]} : vector<64x512xf32> to vector<8x512xf32>
    %82 = arith.addf %81, %80 : vector<8x512xf32>
    %83 = vector.extract_strided_slice %82 {offsets = [0, 0], sizes = [8, 128], strides = [1, 1]} : vector<8x512xf32> to vector<8x128xf32>
    %84 = arith.negf %83 : vector<8x128xf32>
    %85 = math.exp %84 : vector<8x128xf32>
    %cst_27 = arith.constant 1.000000e+00 : f32
    %86 = vector.broadcast %cst_27 : f32 to vector<8x128xf32>
    %87 = arith.addf %86, %85 : vector<8x128xf32>
    %88 = arith.divf %86, %87 : vector<8x128xf32>
    %89 = vector.extract_strided_slice %82 {offsets = [0, 128], sizes = [8, 128], strides = [1, 1]} : vector<8x512xf32> to vector<8x128xf32>
    %90 = arith.negf %89 : vector<8x128xf32>
    %91 = math.exp %90 : vector<8x128xf32>
    %cst_28 = arith.constant 1.000000e+00 : f32
    %92 = vector.broadcast %cst_28 : f32 to vector<8x128xf32>
    %93 = arith.addf %92, %91 : vector<8x128xf32>
    %94 = arith.divf %92, %93 : vector<8x128xf32>
    %95 = vector.extract_strided_slice %82 {offsets = [0, 256], sizes = [8, 128], strides = [1, 1]} : vector<8x512xf32> to vector<8x128xf32>
    %96 = math.tanh %95 : vector<8x128xf32>
    %97 = vector.extract_strided_slice %82 {offsets = [0, 384], sizes = [8, 128], strides = [1, 1]} : vector<8x512xf32> to vector<8x128xf32>
    %98 = arith.negf %97 : vector<8x128xf32>
    %99 = math.exp %98 : vector<8x128xf32>
    %cst_29 = arith.constant 1.000000e+00 : f32
    %100 = vector.broadcast %cst_29 : f32 to vector<8x128xf32>
    %101 = arith.addf %100, %99 : vector<8x128xf32>
    %102 = arith.divf %100, %101 : vector<8x128xf32>
    %103 = arith.mulf %94, %75 : vector<8x128xf32>
    %104 = arith.mulf %88, %96 : vector<8x128xf32>
    %105 = arith.addf %103, %104 : vector<8x128xf32>
    %106 = math.tanh %105 : vector<8x128xf32>
    %107 = arith.mulf %102, %106 : vector<8x128xf32>
    %108 = arith.truncf %107 : vector<8x128xf32> to vector<8x128xbf16>
    %c0_30 = arith.constant 0 : index
    %c0_31 = arith.constant 0 : index
    %109 = vector.load %arg4[%c0_30, %c0_31] : memref<128x512xbf16, #tpu.memory_space<vmem>>, vector<128x512xbf16>
    %cst_32 = arith.constant dense<0.000000e+00> : vector<8x512xf32>
    %110 = tpu.matmul %108, %109, %cst_32 {dimension_numbers = #tpu.dot_dimension_numbers<[1], [0], [0], [1], [0, 0, 1, 1], [], []>} : vector<8x128xbf16>, vector<128x512xbf16>, vector<8x512xf32> -> vector<8x512xf32>
    %111 = vector.extract_strided_slice %15 {offsets = [24, 0], sizes = [8, 512], strides = [1, 1]} : vector<64x512xf32> to vector<8x512xf32>
    %112 = arith.addf %111, %110 : vector<8x512xf32>
    %113 = vector.extract_strided_slice %112 {offsets = [0, 0], sizes = [8, 128], strides = [1, 1]} : vector<8x512xf32> to vector<8x128xf32>
    %114 = arith.negf %113 : vector<8x128xf32>
    %115 = math.exp %114 : vector<8x128xf32>
    %cst_33 = arith.constant 1.000000e+00 : f32
    %116 = vector.broadcast %cst_33 : f32 to vector<8x128xf32>
    %117 = arith.addf %116, %115 : vector<8x128xf32>
    %118 = arith.divf %116, %117 : vector<8x128xf32>
    %119 = vector.extract_strided_slice %112 {offsets = [0, 128], sizes = [8, 128], strides = [1, 1]} : vector<8x512xf32> to vector<8x128xf32>
    %120 = arith.negf %119 : vector<8x128xf32>
    %121 = math.exp %120 : vector<8x128xf32>
    %cst_34 = arith.constant 1.000000e+00 : f32
    %122 = vector.broadcast %cst_34 : f32 to vector<8x128xf32>
    %123 = arith.addf %122, %121 : vector<8x128xf32>
    %124 = arith.divf %122, %123 : vector<8x128xf32>
    %125 = vector.extract_strided_slice %112 {offsets = [0, 256], sizes = [8, 128], strides = [1, 1]} : vector<8x512xf32> to vector<8x128xf32>
    %126 = math.tanh %125 : vector<8x128xf32>
    %127 = vector.extract_strided_slice %112 {offsets = [0, 384], sizes = [8, 128], strides = [1, 1]} : vector<8x512xf32> to vector<8x128xf32>
    %128 = arith.negf %127 : vector<8x128xf32>
    %129 = math.exp %128 : vector<8x128xf32>
    %cst_35 = arith.constant 1.000000e+00 : f32
    %130 = vector.broadcast %cst_35 : f32 to vector<8x128xf32>
    %131 = arith.addf %130, %129 : vector<8x128xf32>
    %132 = arith.divf %130, %131 : vector<8x128xf32>
    %133 = arith.mulf %124, %105 : vector<8x128xf32>
    %134 = arith.mulf %118, %126 : vector<8x128xf32>
    %135 = arith.addf %133, %134 : vector<8x128xf32>
    %136 = math.tanh %135 : vector<8x128xf32>
    %137 = arith.mulf %132, %136 : vector<8x128xf32>
    %138 = arith.truncf %137 : vector<8x128xf32> to vector<8x128xbf16>
    %c0_36 = arith.constant 0 : index
    %c0_37 = arith.constant 0 : index
    %139 = vector.load %arg4[%c0_36, %c0_37] : memref<128x512xbf16, #tpu.memory_space<vmem>>, vector<128x512xbf16>
    %cst_38 = arith.constant dense<0.000000e+00> : vector<8x512xf32>
    %140 = tpu.matmul %138, %139, %cst_38 {dimension_numbers = #tpu.dot_dimension_numbers<[1], [0], [0], [1], [0, 0, 1, 1], [], []>} : vector<8x128xbf16>, vector<128x512xbf16>, vector<8x512xf32> -> vector<8x512xf32>
    %141 = vector.extract_strided_slice %15 {offsets = [32, 0], sizes = [8, 512], strides = [1, 1]} : vector<64x512xf32> to vector<8x512xf32>
    %142 = arith.addf %141, %140 : vector<8x512xf32>
    %143 = vector.extract_strided_slice %142 {offsets = [0, 0], sizes = [8, 128], strides = [1, 1]} : vector<8x512xf32> to vector<8x128xf32>
    %144 = arith.negf %143 : vector<8x128xf32>
    %145 = math.exp %144 : vector<8x128xf32>
    %cst_39 = arith.constant 1.000000e+00 : f32
    %146 = vector.broadcast %cst_39 : f32 to vector<8x128xf32>
    %147 = arith.addf %146, %145 : vector<8x128xf32>
    %148 = arith.divf %146, %147 : vector<8x128xf32>
    %149 = vector.extract_strided_slice %142 {offsets = [0, 128], sizes = [8, 128], strides = [1, 1]} : vector<8x512xf32> to vector<8x128xf32>
    %150 = arith.negf %149 : vector<8x128xf32>
    %151 = math.exp %150 : vector<8x128xf32>
    %cst_40 = arith.constant 1.000000e+00 : f32
    %152 = vector.broadcast %cst_40 : f32 to vector<8x128xf32>
    %153 = arith.addf %152, %151 : vector<8x128xf32>
    %154 = arith.divf %152, %153 : vector<8x128xf32>
    %155 = vector.extract_strided_slice %142 {offsets = [0, 256], sizes = [8, 128], strides = [1, 1]} : vector<8x512xf32> to vector<8x128xf32>
    %156 = math.tanh %155 : vector<8x128xf32>
    %157 = vector.extract_strided_slice %142 {offsets = [0, 384], sizes = [8, 128], strides = [1, 1]} : vector<8x512xf32> to vector<8x128xf32>
    %158 = arith.negf %157 : vector<8x128xf32>
    %159 = math.exp %158 : vector<8x128xf32>
    %cst_41 = arith.constant 1.000000e+00 : f32
    %160 = vector.broadcast %cst_41 : f32 to vector<8x128xf32>
    %161 = arith.addf %160, %159 : vector<8x128xf32>
    %162 = arith.divf %160, %161 : vector<8x128xf32>
    %163 = arith.mulf %154, %135 : vector<8x128xf32>
    %164 = arith.mulf %148, %156 : vector<8x128xf32>
    %165 = arith.addf %163, %164 : vector<8x128xf32>
    %166 = math.tanh %165 : vector<8x128xf32>
    %167 = arith.mulf %162, %166 : vector<8x128xf32>
    %168 = arith.truncf %167 : vector<8x128xf32> to vector<8x128xbf16>
    %c0_42 = arith.constant 0 : index
    %c0_43 = arith.constant 0 : index
    %169 = vector.load %arg4[%c0_42, %c0_43] : memref<128x512xbf16, #tpu.memory_space<vmem>>, vector<128x512xbf16>
    %cst_44 = arith.constant dense<0.000000e+00> : vector<8x512xf32>
    %170 = tpu.matmul %168, %169, %cst_44 {dimension_numbers = #tpu.dot_dimension_numbers<[1], [0], [0], [1], [0, 0, 1, 1], [], []>} : vector<8x128xbf16>, vector<128x512xbf16>, vector<8x512xf32> -> vector<8x512xf32>
    %171 = vector.extract_strided_slice %15 {offsets = [40, 0], sizes = [8, 512], strides = [1, 1]} : vector<64x512xf32> to vector<8x512xf32>
    %172 = arith.addf %171, %170 : vector<8x512xf32>
    %173 = vector.extract_strided_slice %172 {offsets = [0, 0], sizes = [8, 128], strides = [1, 1]} : vector<8x512xf32> to vector<8x128xf32>
    %174 = arith.negf %173 : vector<8x128xf32>
    %175 = math.exp %174 : vector<8x128xf32>
    %cst_45 = arith.constant 1.000000e+00 : f32
    %176 = vector.broadcast %cst_45 : f32 to vector<8x128xf32>
    %177 = arith.addf %176, %175 : vector<8x128xf32>
    %178 = arith.divf %176, %177 : vector<8x128xf32>
    %179 = vector.extract_strided_slice %172 {offsets = [0, 128], sizes = [8, 128], strides = [1, 1]} : vector<8x512xf32> to vector<8x128xf32>
    %180 = arith.negf %179 : vector<8x128xf32>
    %181 = math.exp %180 : vector<8x128xf32>
    %cst_46 = arith.constant 1.000000e+00 : f32
    %182 = vector.broadcast %cst_46 : f32 to vector<8x128xf32>
    %183 = arith.addf %182, %181 : vector<8x128xf32>
    %184 = arith.divf %182, %183 : vector<8x128xf32>
    %185 = vector.extract_strided_slice %172 {offsets = [0, 256], sizes = [8, 128], strides = [1, 1]} : vector<8x512xf32> to vector<8x128xf32>
    %186 = math.tanh %185 : vector<8x128xf32>
    %187 = vector.extract_strided_slice %172 {offsets = [0, 384], sizes = [8, 128], strides = [1, 1]} : vector<8x512xf32> to vector<8x128xf32>
    %188 = arith.negf %187 : vector<8x128xf32>
    %189 = math.exp %188 : vector<8x128xf32>
    %cst_47 = arith.constant 1.000000e+00 : f32
    %190 = vector.broadcast %cst_47 : f32 to vector<8x128xf32>
    %191 = arith.addf %190, %189 : vector<8x128xf32>
    %192 = arith.divf %190, %191 : vector<8x128xf32>
    %193 = arith.mulf %184, %165 : vector<8x128xf32>
    %194 = arith.mulf %178, %186 : vector<8x128xf32>
    %195 = arith.addf %193, %194 : vector<8x128xf32>
    %196 = math.tanh %195 : vector<8x128xf32>
    %197 = arith.mulf %192, %196 : vector<8x128xf32>
    %198 = arith.truncf %197 : vector<8x128xf32> to vector<8x128xbf16>
    %c0_48 = arith.constant 0 : index
    %c0_49 = arith.constant 0 : index
    %199 = vector.load %arg4[%c0_48, %c0_49] : memref<128x512xbf16, #tpu.memory_space<vmem>>, vector<128x512xbf16>
    %cst_50 = arith.constant dense<0.000000e+00> : vector<8x512xf32>
    %200 = tpu.matmul %198, %199, %cst_50 {dimension_numbers = #tpu.dot_dimension_numbers<[1], [0], [0], [1], [0, 0, 1, 1], [], []>} : vector<8x128xbf16>, vector<128x512xbf16>, vector<8x512xf32> -> vector<8x512xf32>
    %201 = vector.extract_strided_slice %15 {offsets = [48, 0], sizes = [8, 512], strides = [1, 1]} : vector<64x512xf32> to vector<8x512xf32>
    %202 = arith.addf %201, %200 : vector<8x512xf32>
    %203 = vector.extract_strided_slice %202 {offsets = [0, 0], sizes = [8, 128], strides = [1, 1]} : vector<8x512xf32> to vector<8x128xf32>
    %204 = arith.negf %203 : vector<8x128xf32>
    %205 = math.exp %204 : vector<8x128xf32>
    %cst_51 = arith.constant 1.000000e+00 : f32
    %206 = vector.broadcast %cst_51 : f32 to vector<8x128xf32>
    %207 = arith.addf %206, %205 : vector<8x128xf32>
    %208 = arith.divf %206, %207 : vector<8x128xf32>
    %209 = vector.extract_strided_slice %202 {offsets = [0, 128], sizes = [8, 128], strides = [1, 1]} : vector<8x512xf32> to vector<8x128xf32>
    %210 = arith.negf %209 : vector<8x128xf32>
    %211 = math.exp %210 : vector<8x128xf32>
    %cst_52 = arith.constant 1.000000e+00 : f32
    %212 = vector.broadcast %cst_52 : f32 to vector<8x128xf32>
    %213 = arith.addf %212, %211 : vector<8x128xf32>
    %214 = arith.divf %212, %213 : vector<8x128xf32>
    %215 = vector.extract_strided_slice %202 {offsets = [0, 256], sizes = [8, 128], strides = [1, 1]} : vector<8x512xf32> to vector<8x128xf32>
    %216 = math.tanh %215 : vector<8x128xf32>
    %217 = vector.extract_strided_slice %202 {offsets = [0, 384], sizes = [8, 128], strides = [1, 1]} : vector<8x512xf32> to vector<8x128xf32>
    %218 = arith.negf %217 : vector<8x128xf32>
    %219 = math.exp %218 : vector<8x128xf32>
    %cst_53 = arith.constant 1.000000e+00 : f32
    %220 = vector.broadcast %cst_53 : f32 to vector<8x128xf32>
    %221 = arith.addf %220, %219 : vector<8x128xf32>
    %222 = arith.divf %220, %221 : vector<8x128xf32>
    %223 = arith.mulf %214, %195 : vector<8x128xf32>
    %224 = arith.mulf %208, %216 : vector<8x128xf32>
    %225 = arith.addf %223, %224 : vector<8x128xf32>
    %226 = math.tanh %225 : vector<8x128xf32>
    %227 = arith.mulf %222, %226 : vector<8x128xf32>
    %228 = arith.truncf %227 : vector<8x128xf32> to vector<8x128xbf16>
    %c0_54 = arith.constant 0 : index
    %c0_55 = arith.constant 0 : index
    %229 = vector.load %arg4[%c0_54, %c0_55] : memref<128x512xbf16, #tpu.memory_space<vmem>>, vector<128x512xbf16>
    %cst_56 = arith.constant dense<0.000000e+00> : vector<8x512xf32>
    %230 = tpu.matmul %228, %229, %cst_56 {dimension_numbers = #tpu.dot_dimension_numbers<[1], [0], [0], [1], [0, 0, 1, 1], [], []>} : vector<8x128xbf16>, vector<128x512xbf16>, vector<8x512xf32> -> vector<8x512xf32>
    %231 = vector.extract_strided_slice %15 {offsets = [56, 0], sizes = [8, 512], strides = [1, 1]} : vector<64x512xf32> to vector<8x512xf32>
    %232 = arith.addf %231, %230 : vector<8x512xf32>
    %233 = vector.extract_strided_slice %232 {offsets = [0, 0], sizes = [8, 128], strides = [1, 1]} : vector<8x512xf32> to vector<8x128xf32>
    %234 = arith.negf %233 : vector<8x128xf32>
    %235 = math.exp %234 : vector<8x128xf32>
    %cst_57 = arith.constant 1.000000e+00 : f32
    %236 = vector.broadcast %cst_57 : f32 to vector<8x128xf32>
    %237 = arith.addf %236, %235 : vector<8x128xf32>
    %238 = arith.divf %236, %237 : vector<8x128xf32>
    %239 = vector.extract_strided_slice %232 {offsets = [0, 128], sizes = [8, 128], strides = [1, 1]} : vector<8x512xf32> to vector<8x128xf32>
    %240 = arith.negf %239 : vector<8x128xf32>
    %241 = math.exp %240 : vector<8x128xf32>
    %cst_58 = arith.constant 1.000000e+00 : f32
    %242 = vector.broadcast %cst_58 : f32 to vector<8x128xf32>
    %243 = arith.addf %242, %241 : vector<8x128xf32>
    %244 = arith.divf %242, %243 : vector<8x128xf32>
    %245 = vector.extract_strided_slice %232 {offsets = [0, 256], sizes = [8, 128], strides = [1, 1]} : vector<8x512xf32> to vector<8x128xf32>
    %246 = math.tanh %245 : vector<8x128xf32>
    %247 = vector.extract_strided_slice %232 {offsets = [0, 384], sizes = [8, 128], strides = [1, 1]} : vector<8x512xf32> to vector<8x128xf32>
    %248 = arith.negf %247 : vector<8x128xf32>
    %249 = math.exp %248 : vector<8x128xf32>
    %cst_59 = arith.constant 1.000000e+00 : f32
    %250 = vector.broadcast %cst_59 : f32 to vector<8x128xf32>
    %251 = arith.addf %250, %249 : vector<8x128xf32>
    %252 = arith.divf %250, %251 : vector<8x128xf32>
    %253 = arith.mulf %244, %225 : vector<8x128xf32>
    %254 = arith.mulf %238, %246 : vector<8x128xf32>
    %255 = arith.addf %253, %254 : vector<8x128xf32>
    %256 = math.tanh %255 : vector<8x128xf32>
    %257 = arith.mulf %252, %256 : vector<8x128xf32>
    %258 = tpu.concatenate %47, %77, %107, %137, %167, %197, %227, %257 in 0 : vector<8x128xf32>, vector<8x128xf32>, vector<8x128xf32>, vector<8x128xf32>, vector<8x128xf32>, vector<8x128xf32>, vector<8x128xf32>, vector<8x128xf32> -> vector<64x128xf32>
    %259 = arith.truncf %258 : vector<64x128xf32> to vector<64x128xbf16>
    %c0_60 = arith.constant 0 : index
    %c0_61 = arith.constant 0 : index
    %260 = vector.load %arg6[%c0_60, %c0_61] : memref<128x128xbf16, #tpu.memory_space<vmem>>, vector<128x128xbf16>
    %cst_62 = arith.constant dense<0.000000e+00> : vector<64x128xf32>
    %261 = tpu.matmul %259, %260, %cst_62 {dimension_numbers = #tpu.dot_dimension_numbers<[1], [0], [0], [1], [0, 0, 1, 1], [], []>} : vector<64x128xbf16>, vector<128x128xbf16>, vector<64x128xf32> -> vector<64x128xf32>
    %c0_63 = arith.constant 0 : index
    %c0_64 = arith.constant 0 : index
    %262 = vector.load %arg7[%c0_63, %c0_64] : memref<1x128xf32, #tpu.memory_space<vmem>>, vector<1x128xf32>
    %263 = vector.broadcast %262 : vector<1x128xf32> to vector<64x128xf32>
    %264 = arith.addf %261, %263 : vector<64x128xf32>
    %c0_65 = arith.constant 0 : index
    %c0_66 = arith.constant 0 : index
    %265 = vector.load %arg8[%c0_65, %c0_66] : memref<64x128xf32, #tpu.memory_space<vmem>>, vector<64x128xf32>
    tpu.vector_store %arg8[%c0_65, %c0_66], %264 {strides = array<i32>} : memref<64x128xf32, #tpu.memory_space<vmem>>, vector<64x128xf32>,
    return
  }
  func.func @transform_0(%arg0: i32) -> (i32, i32) {
    %c0_i32 = arith.constant 0 : i32
    %c0_i32_0 = arith.constant 0 : i32
    %c0_i32_1 = arith.constant 0 : i32
    return %c0_i32, %c0_i32_0 : i32, i32
  }
  func.func @transform_1(%arg0: i32) -> (i32, i32) {
    %c0_i32 = arith.constant 0 : i32
    %c0_i32_0 = arith.constant 0 : i32
    %c0_i32_1 = arith.constant 0 : i32
    return %c0_i32, %c0_i32_0 : i32, i32
  }
  func.func @transform_2(%arg0: i32) -> (i32, i32) {
    %c0_i32 = arith.constant 0 : i32
    %c0_i32_0 = arith.constant 0 : i32
    %c0_i32_1 = arith.constant 0 : i32
    return %c0_i32, %c0_i32_0 : i32, i32
  }
  func.func @transform_3(%arg0: i32) -> (i32, i32) {
    %c0_i32 = arith.constant 0 : i32
    %c0_i32_0 = arith.constant 0 : i32
    %c0_i32_1 = arith.constant 0 : i32
    return %c0_i32, %c0_i32_0 : i32, i32
  }
  func.func @transform_4(%arg0: i32) -> (i32, i32) {
    %c0_i32 = arith.constant 0 : i32
    %c0_i32_0 = arith.constant 0 : i32
    %c0_i32_1 = arith.constant 0 : i32
    return %c0_i32, %c0_i32_0 : i32, i32
  }
  func.func @transform_5(%arg0: i32) -> (i32, i32) {
    %c0_i32 = arith.constant 0 : i32
    %c0_i32_0 = arith.constant 0 : i32
    %c0_i32_1 = arith.constant 0 : i32
    return %c0_i32, %c0_i32_0 : i32, i32
  }
  func.func @transform_6(%arg0: i32) -> (i32, i32) {
    %c0_i32 = arith.constant 0 : i32
    %c0_i32_0 = arith.constant 0 : i32
    %c0_i32_1 = arith.constant 0 : i32
    return %c0_i32, %c0_i32_0 : i32, i32
  }
  func.func @transform_7(%arg0: i32) -> (i32, i32) {
    %c0_i32 = arith.constant 0 : i32
    %c0_i32_0 = arith.constant 0 : i32
    %c0_i32_1 = arith.constant 0 : i32
    return %c0_i32, %c0_i32_0 : i32, i32
  }
}

</mosaic_0001>

<bundles_post_ra>
// kernel: tpu_custom_call.1
= control target key start
LH: loop header
LB: loop body
LE: loop exit
PB: predicated region body
PF: predicated region fallthrough
CT: control target
= control target key end

     0   :  { %12 = vsyncpa [#allocation3], 0  ;;  %s3132_s0 = inlined_call_operand.vmem [shape: s32[64,1], index: 0, kind: input, shape index: {}]   ;;  %s3133_s1 = inlined_call_operand.vmem [shape: bf16[128,128], index: 1, kind: input, shape index: {}]   ;;  %s3134_s2 = inlined_call_operand.hbm [shape: bf16[128,512], index: 2, kind: input, shape index: {}]   ;;  %s3135_s3 = inlined_call_operand.hbm [shape: bf16[128,512], index: 3, kind: input, shape index: {}]   ;;  %s3136_s4 = inlined_call_operand.vmem [shape: f32[1,512], index: 4, kind: input, shape index: {}]   ;;  %s3137_s5 = inlined_call_operand.hbm [shape: bf16[128,128], index: 5, kind: input, shape index: {}]   ;;  %s3138_s6 = inlined_call_operand.vmem [shape: f32[1,128], index: 6, kind: input, shape index: {}]   ;;  %s3139_s7 = inlined_call_operand.hbm [shape: f32[64,128], index: 7, kind: output, shape index: {}]  }
   0x1   :  { %13 = vsyncpa [#allocation6], 0 }
   0x2   :  { %14 = vsyncpa [#allocation4], 0  ;;  %s2426_s24 = smov [#allocation5]   ;;  %s2427_s26 = smov [#allocation2]  }
   0x3   :  { %s36_s25 = sshll.u32 %s2426_s24, 4  ;;  %s24_s27 = sshll.u32 %s2427_s26, 4  ;;  %s37_s25 = int_to_ptr.vmem [resolvable:$true] %s36_s25  ;;  %s2478_s27 = int_to_ptr.vmem [resolvable:$true] %s24_s27 }
   0x4   :  { %s2332_s30 = scalar_lea.hbm %s3135_s3, 4096 }
   0x5   :  { %p2333_p0 = scmp.ne.s32.totalorder %s3135_s3, %s2332_s30  ;;  %p2336_p1 = scmp.lt.u32.totalorder %s2332_s30, %s3135_s3 }
   0x7   :  { %p2338_p2 = pnand %p2336_p1, %p2333_p0 }
   0x9   :  { %2341 = shalt.err (!%p2338_p2)
}
   0xa   :  { %s2342_s12 = scalar_lea.vmem %s37_s25, 4096  ;;  %p2347_p4 = scmp.lt.s32.totalorder %s37_s25, %s37_s25 }
   0xb   :  { %p2343_p3 = scmp.ne.s32.totalorder %s37_s25, %s2342_s12  ;;  %p2348_p5 = scmp.lt.s32.totalorder %s2342_s12, %s2342_s12 }
   0xd   :  { %p2349_p6 = por %p2348_p5, %p2347_p4 }
   0xf   :  { %p2350_p7 = pnand %p2349_p6, %p2343_p3 }
  0x11   :  { %2353 = shalt.err (!%p2350_p7)
}
  0x12   :  { %s2428_s13 = smov 256   ;;  %s2429_s14 = smov 16  }
  0x13   :  { %42 = dma.hbm_to_vmem [thread:$0]  %s3135_s3, 4096, %s37_s25, [#allocation6], %s2428_s13, %s2428_s13, %s2429_s14  }
  0x14   :  { %s2354_s19 = scalar_lea.hbm %s3134_s2, 4096 }
  0x15   :  { %p2355_p8 = scmp.ne.s32.totalorder %s3134_s2, %s2354_s19  ;;  %p2358_p9 = scmp.lt.u32.totalorder %s2354_s19, %s3134_s2 }
  0x17   :  { %p2360_p10 = pnand %p2358_p9, %p2355_p8 }
  0x19   :  { %2363 = shalt.err (!%p2360_p10)
}
  0x1a   :  { %s2364_s24 = scalar_lea.vmem %s2478_s27, 4096  ;;  %p2369_p12 = scmp.lt.s32.totalorder %s2478_s27, %s2478_s27 }
  0x1b   :  { %p2365_p11 = scmp.ne.s32.totalorder %s2478_s27, %s2364_s24  ;;  %p2370_p13 = scmp.lt.s32.totalorder %s2364_s24, %s2364_s24 }
  0x1d   :  { %p2371_p0 = por %p2370_p13, %p2369_p12 }
  0x1f   :  { %p2372_p1 = pnand %p2371_p0, %p2365_p11 }
  0x21   :  { %2375 = shalt.err (!%p2372_p1)
}
  0x22   :  { %30 = dma.hbm_to_vmem [thread:$0]  %s3134_s2, 4096, %s2478_s27, [#allocation3], %s2428_s13, %s2428_s13, %s2429_s14  }
  0x23   :  { %s2430_s26 = smov [#allocation7]   ;;  %s2376_s8 = scalar_lea.hbm %s3137_s5, 1024 }
  0x24   :  { %s50_s28 = sshll.u32 %s2430_s26, 4  ;;  %p2377_p2 = scmp.ne.s32.totalorder %s3137_s5, %s2376_s8  ;;  %s51_s28 = int_to_ptr.vmem [resolvable:$true] %s50_s28 }
  0x25   :  { %p2380_p3 = scmp.lt.u32.totalorder %s2376_s8, %s3137_s5 }
  0x27   :  { %p2382_p4 = pnand %p2380_p3, %p2377_p2 }
  0x29   :  { %2385 = shalt.err (!%p2382_p4)
}
  0x2a   :  { %s2386_s15 = scalar_lea.vmem %s51_s28, 1024  ;;  %p2391_p6 = scmp.lt.s32.totalorder %s51_s28, %s51_s28 }
  0x2b   :  { %p2387_p5 = scmp.ne.s32.totalorder %s51_s28, %s2386_s15  ;;  %p2392_p7 = scmp.lt.s32.totalorder %s2386_s15, %s2386_s15 }
  0x2d   :  { %p2393_p8 = por %p2392_p7, %p2391_p6 }
  0x2f   :  { %p2394_p9 = pnand %p2393_p8, %p2387_p5 }
  0x31   :  { %2397 = shalt.err (!%p2394_p9)
}
  0x32   :  { %s2431_s2 = smov 64   ;;  %s2432_s27 = smov 4  }
  0x33   :  { %56 = dma.hbm_to_vmem [thread:$0]  %s3137_s5, 1024, %s51_s28, [#allocation6], %s2431_s2, %s2431_s2, %s2432_s27  }
  0x34   :  { %2420 = dma.done.wait [#allocation3], 4096  }
  0x35   :  { %2421 = vsyncadd [#allocation3], 4294963200 }
  0x36   :  { %2422 = dma.done.wait [#allocation6], 5120  }
  0x37   :  { %2423 = vsyncadd [#allocation6], 4294962176  ;;  %v3140_v0 = vmov 0   ;;  %v71_v1 = vld [vmem:[%s3132_s0 + $0x10] sm:$0xff]  ;;  %v69_v2 = vld [vmem:[%s3132_s0] sm:$0xff]  ;;  %v77_v32 = vlaneseq }
  0x38   :  { %2059 = vset.pattern.permute.xlu1 %v3140_v0  ;;  %2058 = vset.pattern.permute.xlu0 %v3140_v0  ;;  %v72_v3 = vld [vmem:[%s3132_s0 + $0x18] sm:$0xff]  ;;  %v70_v4 = vld [vmem:[%s3132_s0 + $0x8] sm:$0xff]  ;;  %v2060_v5 = vld [vmem:[%s3133_s1] sm:$0xff]   ;;  %v2434_v40 = vmov 1.0|1.0  }
  0x39   :  { %502 = vmatprep.mubr.bf16.mxu1 %v3140_v0  ;;  %86 = vperm.xlu1 %2059, %v71_v1   ;;  %v2061_v6 = vld [vmem:[%s3133_s1 + $0x8] sm:$0xff]   ;;  %v73_v8 = vld [vmem:[%s3132_s0 + $0x20] sm:$0xff]  ;;  %v76_v9 = vld [vmem:[%s3132_s0 + $0x38] sm:$0xff]  ;;  %v78_v35 = vand.u32 127, %v77_v32 }
  0x3a   :  { %80 = vperm.xlu0 %2058, %v69_v2   ;;  %v74_v7 = vld [vmem:[%s3132_s0 + $0x28] sm:$0xff]  ;;  %1998 = vmatprep.subr.bf16.mxu0 %v2060_v5  ;;  %v2062_v10 = vld [vmem:[%s3133_s1 + $0x10] sm:$0xff]   ;;  %v2063_v12 = vld [vmem:[%s3133_s1 + $0x18] sm:$0xff]  }
  0x3b   :  { %1999 = vmatpush3.bf16.msra.mxu0 %v2060_v5  ;;  %v75_v11 = vld [vmem:[%s3132_s0 + $0x30] sm:$0xff]  ;;  %v2064_v13 = vld [vmem:[%s3133_s1 + $0x20] sm:$0xff]   ;;  %v2065_v17 = vld [vmem:[%s3133_s1 + $0x28] sm:$0xff]  }
  0x3c   :  { %2000 = vmatprep.subr.bf16.mxu0 %v2061_v6  ;;  %v2068_v14 = vld [vmem:[#allocation2 + $0x4] ss:$16 sps:$4 sm:$0xff]   ;;  %v2070_v15 = vld [vmem:[#allocation2] ss:$16 sps:$4 sm:$0xff]   ;;  %v2067_v23 = vld [vmem:[%s3133_s1 + $0x38] sm:$0xff]  }
  0x3d   :  { %89 = vperm.xlu1 %2059, %v72_v3   ;;  %v2074_v16 = vld [vmem:[#allocation2 + $0x24] ss:$16 sps:$4 sm:$0xff]   ;;  %470 = vmatprep.subr.bf16.mxu1 %v2068_v14  ;;  %v2076_v18 = vld [vmem:[#allocation2 + $0x20] ss:$16 sps:$4 sm:$0xff]   ;;  %v2073_v26 = vld [vmem:[#allocation2 + $0xc] ss:$16 sps:$4 sm:$0xff]  }
  0x3e   :  { %83 = vperm.xlu0 %2058, %v70_v4   ;;  %471 = vmatpush1.bf16.msra.mxu1 %v2070_v15  ;;  %v2080_v19 = vld [vmem:[#allocation2 + $0x44] ss:$16 sps:$4 sm:$0xff]   ;;  %v2082_v21 = vld [vmem:[#allocation2 + $0x40] ss:$16 sps:$4 sm:$0xff]   ;;  %v2071_v38 = vld [vmem:[#allocation2 + $0x8] ss:$16 sps:$4 sm:$0xff]  }
  0x3f   :  { %2001 = vmatpush3.bf16.msra.mxu0 %v2061_v6  ;;  %472 = vmatprep.subr.bf16.mxu1 %v2074_v16  ;;  %v2066_v20 = vld [vmem:[%s3133_s1 + $0x30] sm:$0xff]   ;;  %v2079_v39 = vld [vmem:[#allocation2 + $0x2c] ss:$16 sps:$4 sm:$0xff]   ;;  %v2077_v43 = vld [vmem:[#allocation2 + $0x28] ss:$16 sps:$4 sm:$0xff]  }
  0x40   :  { %2002 = vmatprep.subr.bf16.mxu0 %v2062_v10  ;;  %v2086_v22 = vld [vmem:[#allocation2 + $0x64] ss:$16 sps:$4 sm:$0xff]   ;;  %v2088_v24 = vld [vmem:[#allocation2 + $0x60] ss:$16 sps:$4 sm:$0xff]   ;;  %v2085_v44 = vld [vmem:[#allocation2 + $0x4c] ss:$16 sps:$4 sm:$0xff]  }
  0x41   :  { %95 = vperm.xlu1 %2059, %v74_v7   ;;  %v2092_v25 = vld [vmem:[#allocation2 + $0x84] ss:$16 sps:$4 sm:$0xff]   ;;  %v2094_v27 = vld [vmem:[#allocation2 + $0x80] ss:$16 sps:$4 sm:$0xff]   ;;  %v2083_v47 = vld [vmem:[#allocation2 + $0x48] ss:$16 sps:$4 sm:$0xff]  }
  0x42   :  { %92 = vperm.xlu0 %2058, %v73_v8   ;;  %473 = vmatpush1.bf16.msra.mxu1 %v2076_v18  ;;  %v2098_v28 = vld [vmem:[#allocation2 + $0xa4] ss:$16 sps:$4 sm:$0xff]   ;;  %v2100_v29 = vld [vmem:[#allocation2 + $0xa0] ss:$16 sps:$4 sm:$0xff]   ;;  %v2091_v48 = vld [vmem:[#allocation2 + $0x6c] ss:$16 sps:$4 sm:$0xff]  }
  0x43   :  { %2003 = vmatpush3.bf16.msra.mxu0 %v2062_v10  ;;  %474 = vmatprep.subr.bf16.mxu1 %v2080_v19  ;;  %v2104_v30 = vld [vmem:[#allocation2 + $0xc4] ss:$16 sps:$4 sm:$0xff]   ;;  %v2106_v31 = vld [vmem:[#allocation2 + $0xc0] ss:$16 sps:$4 sm:$0xff]   ;;  %v2089_v49 = vld [vmem:[#allocation2 + $0x68] ss:$16 sps:$4 sm:$0xff]  }
  0x44   :  { %2004 = vmatprep.subr.bf16.mxu0 %v2063_v12  ;;  %v2097_v50 = vld [vmem:[#allocation2 + $0x8c] ss:$16 sps:$4 sm:$0xff]   ;;  %v2095_v51 = vld [vmem:[#allocation2 + $0x88] ss:$16 sps:$4 sm:$0xff]   ;;  %v2110_v56 = vld [vmem:[#allocation2 + $0xe4] ss:$16 sps:$4 sm:$0xff]  }
  0x45   :  { %101 = vperm.xlu1 %2059, %v76_v9   ;;  %v2103_v52 = vld [vmem:[#allocation2 + $0xac] ss:$16 sps:$4 sm:$0xff]   ;;  %v2101_v53 = vld [vmem:[#allocation2 + $0xa8] ss:$16 sps:$4 sm:$0xff]   ;;  %v2112_v58 = vld [vmem:[#allocation2 + $0xe0] ss:$16 sps:$4 sm:$0xff]  }
  0x46   :  { %98 = vperm.xlu0 %2058, %v75_v11   ;;  %475 = vmatpush1.bf16.msra.mxu1 %v2082_v21  ;;  %v2109_v54 = vld [vmem:[#allocation2 + $0xcc] ss:$16 sps:$4 sm:$0xff]   ;;  %v2107_v55 = vld [vmem:[#allocation2 + $0xc8] ss:$16 sps:$4 sm:$0xff]   ;;  %v2574_v60 = vld [vmem:[#allocation5 + $0x4] ss:$16 sps:$4 sm:$0xff]  }
  0x47   :  { %2005 = vmatpush3.bf16.msra.mxu0 %v2063_v12  ;;  %476 = vmatprep.subr.bf16.mxu1 %v2086_v22  ;;  %v2115_v57 = vld [vmem:[#allocation2 + $0xec] ss:$16 sps:$4 sm:$0xff]   ;;  %v2113_v59 = vld [vmem:[#allocation2 + $0xe8] ss:$16 sps:$4 sm:$0xff]   ;;  %v2580_v4 = vld [vmem:[#allocation5] ss:$16 sps:$4 sm:$0xff]  }
  0x48   :  { %2006 = vmatprep.subr.bf16.mxu0 %v2064_v13  ;;  %v2576_v61 = vld [vmem:[#allocation5 + $0xc] ss:$16 sps:$4 sm:$0xff]   ;;  %v2582_v5 = vld [vmem:[#allocation5 + $0x8] ss:$16 sps:$4 sm:$0xff]   ;;  %v2584_v7 = vld [vmem:[#allocation5 + $0x24] ss:$16 sps:$4 sm:$0xff]  }
  0x49   :  { %v2586_v8 = vld [vmem:[#allocation5 + $0x2c] ss:$16 sps:$4 sm:$0xff]   ;;  %v2590_v9 = vld [vmem:[#allocation5 + $0x20] ss:$16 sps:$4 sm:$0xff]   ;;  %v2592_v10 = vld [vmem:[#allocation5 + $0x28] ss:$16 sps:$4 sm:$0xff]  }
  0x4a   :  { %477 = vmatpush1.bf16.msra.mxu1 %v2088_v24  ;;  %v2596_v12 = vld [vmem:[#allocation5 + $0x44] ss:$16 sps:$4 sm:$0xff]   ;;  %v2604_v18 = vld [vmem:[#allocation5 + $0x40] ss:$16 sps:$4 sm:$0xff]   ;;  %v2606_v19 = vld [vmem:[#allocation5 + $0x48] ss:$16 sps:$4 sm:$0xff]  }
  0x4b   :  { %2007 = vmatpush3.bf16.msra.mxu0 %v2064_v13  ;;  %478 = vmatprep.subr.bf16.mxu1 %v2092_v25  ;;  %v2598_v13 = vld [vmem:[#allocation5 + $0x4c] ss:$16 sps:$4 sm:$0xff]   ;;  %v2610_v21 = vld [vmem:[#allocation5 + $0x64] ss:$16 sps:$4 sm:$0xff]   ;;  %v2618_v24 = vld [vmem:[#allocation5 + $0x68] ss:$16 sps:$4 sm:$0xff]  }
  0x4c   :  { %2008 = vmatprep.subr.bf16.mxu0 %v2065_v17  ;;  %v2612_v22 = vld [vmem:[#allocation5 + $0x6c] ss:$16 sps:$4 sm:$0xff]   ;;  %v2622_v25 = vld [vmem:[#allocation5 + $0x84] ss:$16 sps:$4 sm:$0xff]  }
  0x4e   :  { %479 = vmatpush1.bf16.msra.mxu1 %v2094_v27  ;;  %v2630_v27 = vld [vmem:[#allocation5 + $0x80] ss:$16 sps:$4 sm:$0xff]  }
  0x4f   :  { %2009 = vmatpush3.bf16.msra.mxu0 %v2065_v17  ;;  %480 = vmatprep.subr.bf16.mxu1 %v2098_v28  ;;  %v2632_v28 = vld [vmem:[#allocation5 + $0x88] ss:$16 sps:$4 sm:$0xff]  }
  0x50   :  { %2010 = vmatprep.subr.bf16.mxu0 %v2066_v20 }
  0x52   :  { %481 = vmatpush1.bf16.msra.mxu1 %v2100_v29  ;;  %v2636_v29 = vld [vmem:[#allocation5 + $0xa4] ss:$16 sps:$4 sm:$0xff]  }
  0x53   :  { %2011 = vmatpush3.bf16.msra.mxu0 %v2066_v20  ;;  %482 = vmatprep.subr.bf16.mxu1 %v2104_v30  ;;  %v2638_v30 = vld [vmem:[#allocation5 + $0xac] ss:$16 sps:$4 sm:$0xff]  }
  0x54   :  { %2012 = vmatprep.subr.bf16.mxu0 %v2067_v23 }
  0x56   :  { %483 = vmatpush1.bf16.msra.mxu1 %v2106_v31  ;;  %v2642_v31 = vld [vmem:[#allocation5 + $0xa0] ss:$16 sps:$4 sm:$0xff]  }
  0x57   :  { %2013 = vmatpush3.bf16.msra.mxu0 %v2067_v23  ;;  %484 = vmatprep.subr.bf16.mxu1 %v2110_v56  ;;  %v2616_v23 = vld [vmem:[#allocation5 + $0x60] ss:$16 sps:$4 sm:$0xff]  }
  0x58   :  { %543 = vmatprep.subr.bf16.mxu0 %v2073_v26  ;;  %v2624_v26 = vld [vmem:[#allocation5 + $0x8c] ss:$16 sps:$4 sm:$0xff]  }
  0x5a   :  { %485 = vmatpush1.bf16.msra.mxu1 %v2112_v58 }
  0x5b   :  { %808 = vmatprep.subr.bf16.mxu1 %v2574_v60 }
  0xb8   :  { %v87_v33 = vpop.permute.xlu1 %86 }
  0xb9   :  { %v81_v34 = vpop.permute.xlu0 %80  ;;  %vm105_vm0 = vcmp.eq.s32.totalorder %v78_v35, %v87_v33  ;;  %v2644_v33 = vld [vmem:[#allocation5 + $0xa8] ss:$16 sps:$4 sm:$0xff]  }
  0xba   :  { %vm103_vm3 = vcmp.eq.s32.totalorder %v78_v35, %v81_v34  ;;  %v2648_v34 = vld [vmem:[#allocation5 + $0xc4] ss:$16 sps:$4 sm:$0xff]  }
  0xbc   :  { %v90_v36 = vpop.permute.xlu1 %89 }
  0xbd   :  { %v84_v37 = vpop.permute.xlu0 %83  ;;  %vm106_vm1 = vcmp.eq.s32.totalorder %v78_v35, %v90_v36  ;;  %v2656_v36 = vld [vmem:[#allocation5 + $0xc0] ss:$16 sps:$4 sm:$0xff]  }
  0xbe   :  { %vm104_vm2 = vcmp.eq.s32.totalorder %v78_v35, %v84_v37  ;;  %vm1871_vm4 = vmpackc.low %vm106_vm1, %vm105_vm0  ;;  %v2658_v37 = vld [vmem:[#allocation5 + $0xc8] ss:$16 sps:$4 sm:$0xff]  }
  0xbf   :  { %vm1869_vm5 = vmpackc.low %vm104_vm2, %vm103_vm3 }
  0xc0   :  { %2014 = vmatprep.mubr.msk.bf16.mxu0 %vm1869_vm5, %v2434_v40  ;;  %v96_v41 = vpop.permute.xlu1 %95 }
  0xc1   :  { %v93_v42 = vpop.permute.xlu0 %92  ;;  %vm108_vm6 = vcmp.eq.s32.totalorder %v78_v35, %v96_v41  ;;  %2015 = vmatmul.mubr.msk.bf16.vlgmr.msra.gmra.mrb[0].mxu0 %vm1871_vm4, %v2434_v40  ;;  %v2670_v41 = vld [vmem:[#allocation5 + $0xe8] ss:$16 sps:$4 sm:$0xff]  }
  0xc2   :  { %vm107_vm7 = vcmp.eq.s32.totalorder %v78_v35, %v93_v42  ;;  %544 = vmatpush1.bf16.msra.mxu0 %v2071_v38  ;;  %v2662_v38 = vld [vmem:[#allocation5 + $0xe4] ss:$16 sps:$4 sm:$0xff]   ;;  %v291_v42 = vshrl.u32 %v77_v32, 7 }
  0xc3   :  { %vm1873_vm8 = vmpackc.low %vm108_vm6, %vm107_vm7  ;;  %545 = vmatprep.subr.bf16.mxu0 %v2079_v39  ;;  %v2664_v39 = vld [vmem:[#allocation5 + $0xec] ss:$16 sps:$4 sm:$0xff]  }
  0xc4   :  { %2018 = vmatprep.mubr.msk.bf16.mxu0 %vm1873_vm8, %v2434_v40  ;;  %v102_v45 = vpop.permute.xlu1 %101 }
  0xc5   :  { %v99_v46 = vpop.permute.xlu0 %98  ;;  %vm110_vm9 = vcmp.eq.s32.totalorder %v78_v35, %v102_v45  ;;  %v288_v45 = vld [vmem:[%s3136_s4] sm:$0xf] }
  0xc6   :  { %vm109_vm10 = vcmp.eq.s32.totalorder %v78_v35, %v99_v46  ;;  %546 = vmatpush1.bf16.msra.mxu0 %v2077_v43  ;;  %v2650_v35 = vld [vmem:[#allocation5 + $0xcc] ss:$16 sps:$4 sm:$0xff]   ;;  %v292_v43 = vsub.s32 0, %v291_v42  ;;  %v296_v46 = vsub.s32 1, %v291_v42 }
  0xc7   :  { %vm1875_vm11 = vmpackc.low %vm110_vm9, %vm109_vm10  ;;  %547 = vmatprep.subr.bf16.mxu0 %v2085_v44  ;;  %v300_v44 = vsub.s32 2, %v291_v42 }
  0xc9   :  { %2019 = vmatmul.mubr.msk.bf16.gmra.mrb[4].mxu0 %vm1875_vm11, %v2434_v40  ;;  %v2668_v40 = vld [vmem:[#allocation5 + $0xe0] ss:$16 sps:$4 sm:$0xff]  }
  0xca   :  { %548 = vmatpush1.bf16.msra.mxu0 %v2083_v47  ;;  %575 = vmatprep.mubr.bf16.mxu0 %v3140_v0  ;;  %v304_v47 = vsub.s32 3, %v291_v42 }
  0xcb   :  { %549 = vmatprep.subr.bf16.mxu0 %v2091_v48  ;;  %v293_v48 = vrot.slane %v288_v45, %v292_v43 }
  0xce   :  { %550 = vmatpush1.bf16.msra.mxu0 %v2089_v49  ;;  %v301_v49 = vrot.slane %v288_v45, %v300_v44 }
  0xcf   :  { %551 = vmatprep.subr.bf16.mxu0 %v2097_v50  ;;  %v2720_v50 = vrot.slane %v288_v45, %v296_v46 }
  0xd2   :  { %552 = vmatpush1.bf16.msra.mxu0 %v2095_v51  ;;  %v2722_v51 = vrot.slane %v288_v45, %v304_v47 }
  0xd3   :  { %553 = vmatprep.subr.bf16.mxu0 %v2103_v52 }
  0xd6   :  { %554 = vmatpush1.bf16.msra.mxu0 %v2101_v53 }
  0xd7   :  { %555 = vmatprep.subr.bf16.mxu0 %v2109_v54 }
  0xda   :  { %556 = vmatpush1.bf16.msra.mxu0 %v2107_v55 }
  0xdb   :  { %557 = vmatprep.subr.bf16.mxu0 %v2115_v57 }
  0xde   :  { %558 = vmatpush1.bf16.msra.mxu0 %v2113_v59 }
  0xdf   :  { %849 = vmatprep.subr.bf16.mxu0 %v2576_v61 }
 0x194   :  { %v2016_v62 = vpop.f32.mrb[0].mxu0 }
 0x195   :  { %v221_v63 = vpop.f32.mrb[1].mxu0 }
 0x196   :  { %v2017_v1 = vpop.f32.mrb[2].mxu0 }
 0x197   :  { %v253_v2 = vpack.c.bf16 %v2017_v1, %v2016_v62  ;;  %v224_v3 = vpop.f32.mrb[3].mxu0 }
 0x198   :  { %v252_v6 = vpack.c.bf16 %v224_v3, %v221_v63 }
 0x19a   :  { %503 = vmatmul.mubr.bf16.vlgmr.msra.gmra.mrb[0].mxu1 %v252_v6  ;;  %576 = vmatmul.mubr.bf16.vlgmr.msra.gmra.mrb[8].mxu0 %v252_v6 }
 0x19b   :  { %809 = vmatpush1.bf16.msra.mxu1 %v2580_v4  ;;  %850 = vmatpush1.bf16.msra.mxu0 %v2582_v5 }
 0x19c   :  { %v2020_v11 = vpop.f32.mrb[4].mxu0  ;;  %810 = vmatprep.subr.bf16.mxu1 %v2584_v7  ;;  %851 = vmatprep.subr.bf16.mxu0 %v2586_v8 }
 0x19d   :  { %v237_v14 = vpop.f32.mrb[5].mxu0  ;;  %512 = vmatprep.mubr.bf16.mxu1 %v3140_v0  ;;  %585 = vmatprep.mubr.bf16.mxu0 %v3140_v0 }
 0x19e   :  { %v2021_v15 = vpop.f32.mrb[6].mxu0 }
 0x19f   :  { %v255_v16 = vpack.c.bf16 %v2021_v15, %v2020_v11  ;;  %811 = vmatpush1.bf16.msra.mxu1 %v2590_v9  ;;  %v240_v17 = vpop.f32.mrb[7].mxu0  ;;  %852 = vmatpush1.bf16.msra.mxu0 %v2592_v10 }
 0x1a0   :  { %v254_v20 = vpack.c.bf16 %v240_v17, %v237_v14  ;;  %812 = vmatprep.subr.bf16.mxu1 %v2596_v12  ;;  %853 = vmatprep.subr.bf16.mxu0 %v2598_v13 }
 0x1a2   :  { %513 = vmatmul.mubr.bf16.gmra.mrb[4].mxu1 %v253_v2  ;;  %586 = vmatmul.mubr.bf16.gmra.mrb[12].mxu0 %v253_v2 }
 0x1a3   :  { %813 = vmatpush1.bf16.msra.mxu1 %v2604_v18  ;;  %854 = vmatpush1.bf16.msra.mxu0 %v2606_v19 }
 0x1a4   :  { %814 = vmatprep.subr.bf16.mxu1 %v2610_v21  ;;  %855 = vmatprep.subr.bf16.mxu0 %v2612_v22 }
 0x1a5   :  { %522 = vmatprep.mubr.bf16.mxu1 %v3140_v0  ;;  %595 = vmatprep.mubr.bf16.mxu0 %v3140_v0 }
 0x1a7   :  { %815 = vmatpush1.bf16.msra.mxu1 %v2616_v23  ;;  %856 = vmatpush1.bf16.msra.mxu0 %v2618_v24 }
 0x1a8   :  { %816 = vmatprep.subr.bf16.mxu1 %v2622_v25  ;;  %857 = vmatprep.subr.bf16.mxu0 %v2624_v26 }
 0x1aa   :  { %523 = vmatmul.mubr.bf16.gmra.mrb[8].mxu1 %v254_v20  ;;  %596 = vmatmul.mubr.bf16.gmra.mrb[16].mxu0 %v254_v20 }
 0x1ab   :  { %817 = vmatpush1.bf16.msra.mxu1 %v2630_v27  ;;  %858 = vmatpush1.bf16.msra.mxu0 %v2632_v28 }
 0x1ac   :  { %818 = vmatprep.subr.bf16.mxu1 %v2636_v29  ;;  %859 = vmatprep.subr.bf16.mxu0 %v2638_v30 }
 0x1ad   :  { %532 = vmatprep.mubr.bf16.mxu1 %v3140_v0  ;;  %605 = vmatprep.mubr.bf16.mxu0 %v3140_v0 }
 0x1af   :  { %819 = vmatpush1.bf16.msra.mxu1 %v2642_v31  ;;  %860 = vmatpush1.bf16.msra.mxu0 %v2644_v33 }
 0x1b0   :  { %820 = vmatprep.subr.bf16.mxu1 %v2648_v34  ;;  %861 = vmatprep.subr.bf16.mxu0 %v2650_v35 }
 0x1b2   :  { %533 = vmatmul.mubr.bf16.gmra.mrb[12].mxu1 %v255_v16  ;;  %606 = vmatmul.mubr.bf16.gmra.mrb[20].mxu0 %v255_v16 }
 0x1b3   :  { %821 = vmatpush1.bf16.msra.mxu1 %v2656_v36  ;;  %862 = vmatpush1.bf16.msra.mxu0 %v2658_v37 }
 0x1b4   :  { %822 = vmatprep.subr.bf16.mxu1 %v2662_v38  ;;  %863 = vmatprep.subr.bf16.mxu0 %v2664_v39 }
 0x1b5   :  { %840 = vmatprep.mubr.bf16.mxu1 %v3140_v0  ;;  %881 = vmatprep.mubr.bf16.mxu0 %v3140_v0 }
 0x1b7   :  { %823 = vmatpush1.bf16.msra.mxu1 %v2668_v40  ;;  %864 = vmatpush1.bf16.msra.mxu0 %v2670_v41 }
 0x1b8   :  { %919 = vmatprep.subr.bf16.mxu1 %v2574_v60  ;;  %960 = vmatprep.subr.bf16.mxu0 %v2576_v61 }
 0x1ba   :  { %841 = vmatmul.mubr.bf16.vlgmr.msra.gmra.mrb[16].mxu1 %v3140_v0  ;;  %882 = vmatmul.mubr.bf16.vlgmr.msra.gmra.mrb[24].mxu0 %v3140_v0 }
 0x1bb   :  { %920 = vmatpush1.bf16.msra.mxu1 %v2580_v4  ;;  %961 = vmatpush1.bf16.msra.mxu0 %v2582_v5 }
 0x1bc   :  { %921 = vmatprep.subr.bf16.mxu1 %v2584_v7  ;;  %962 = vmatprep.subr.bf16.mxu0 %v2586_v8 }
 0x1bd   :  { %951 = vmatprep.mubr.bf16.mxu1 %v3140_v0  ;;  %992 = vmatprep.mubr.bf16.mxu0 %v3140_v0 }
 0x1bf   :  { %922 = vmatpush1.bf16.msra.mxu1 %v2590_v9  ;;  %963 = vmatpush1.bf16.msra.mxu0 %v2592_v10 }
 0x1c0   :  { %923 = vmatprep.subr.bf16.mxu1 %v2596_v12  ;;  %964 = vmatprep.subr.bf16.mxu0 %v2598_v13 }
 0x1c3   :  { %924 = vmatpush1.bf16.msra.mxu1 %v2604_v18  ;;  %965 = vmatpush1.bf16.msra.mxu0 %v2606_v19 }
 0x1c4   :  { %925 = vmatprep.subr.bf16.mxu1 %v2610_v21  ;;  %966 = vmatprep.subr.bf16.mxu0 %v2612_v22 }
 0x1c7   :  { %926 = vmatpush1.bf16.msra.mxu1 %v2616_v23  ;;  %967 = vmatpush1.bf16.msra.mxu0 %v2618_v24 }
 0x1c8   :  { %927 = vmatprep.subr.bf16.mxu1 %v2622_v25  ;;  %968 = vmatprep.subr.bf16.mxu0 %v2624_v26 }
 0x1cb   :  { %928 = vmatpush1.bf16.msra.mxu1 %v2630_v27  ;;  %969 = vmatpush1.bf16.msra.mxu0 %v2632_v28 }
 0x1cc   :  { %929 = vmatprep.subr.bf16.mxu1 %v2636_v29  ;;  %970 = vmatprep.subr.bf16.mxu0 %v2638_v30 }
 0x1cf   :  { %930 = vmatpush1.bf16.msra.mxu1 %v2642_v31  ;;  %971 = vmatpush1.bf16.msra.mxu0 %v2644_v33 }
 0x1d0   :  { %931 = vmatprep.subr.bf16.mxu1 %v2648_v34  ;;  %972 = vmatprep.subr.bf16.mxu0 %v2650_v35 }
 0x1d3   :  { %932 = vmatpush1.bf16.msra.mxu1 %v2656_v36  ;;  %973 = vmatpush1.bf16.msra.mxu0 %v2658_v37 }
 0x1d4   :  { %933 = vmatprep.subr.bf16.mxu1 %v2662_v38  ;;  %974 = vmatprep.subr.bf16.mxu0 %v2664_v39 }
 0x1d7   :  { %934 = vmatpush1.bf16.msra.mxu1 %v2668_v40  ;;  %975 = vmatpush1.bf16.msra.mxu0 %v2670_v41 }
 0x1d8   :  { %1030 = vmatprep.subr.bf16.mxu1 %v2574_v60  ;;  %1071 = vmatprep.subr.bf16.mxu0 %v2576_v61 }
 0x26d   :  { %v504_v52 = vpop.f32.mrb[0].mxu1  ;;  %v577_v53 = vpop.f32.mrb[8].mxu0 }
 0x26e   :  { %v2724_v54 = vadd.f32 %v504_v52, %v293_v48  ;;  %v2726_v55 = vadd.f32 %v577_v53, %v301_v49  ;;  %v506_v32 = vpop.f32.mrb[1].mxu1  ;;  %v579_v56 = vpop.f32.mrb[9].mxu0 }
 0x26f   :  { %v2729_v57 = vadd.f32 %v506_v32, %v2720_v50  ;;  %v2732_v58 = vadd.f32 %v579_v56, %v2722_v51  ;;  %v508_v59 = vpop.f32.mrb[2].mxu1  ;;  %v581_v62 = vpop.f32.mrb[10].mxu0 }
 0x270   :  { %v2734_v63 = vadd.f32 %v508_v59, %v293_v48  ;;  %v2736_v1 = vadd.f32 %v581_v62, %v301_v49  ;;  %v510_v2 = vpop.f32.mrb[3].mxu1  ;;  %v583_v3 = vpop.f32.mrb[11].mxu0 }
 0x271   :  { %v2739_v6 = vadd.f32 %v510_v2, %v2720_v50  ;;  %v2742_v11 = vadd.f32 %v583_v3, %v2722_v51 }
 0x275   :  { %v514_v14 = vpop.f32.mrb[4].mxu1  ;;  %v587_v15 = vpop.f32.mrb[12].mxu0 }
 0x276   :  { %v2744_v16 = vadd.f32 %v514_v14, %v293_v48  ;;  %v2746_v17 = vadd.f32 %v587_v15, %v301_v49  ;;  %v516_v20 = vpop.f32.mrb[5].mxu1  ;;  %v589_v42 = vpop.f32.mrb[13].mxu0 }
 0x277   :  { %v2749_v43 = vadd.f32 %v516_v20, %v2720_v50  ;;  %v2752_v44 = vadd.f32 %v589_v42, %v2722_v51  ;;  %v518_v45 = vpop.f32.mrb[6].mxu1  ;;  %v591_v46 = vpop.f32.mrb[14].mxu0 }
 0x278   :  { %v2754_v47 = vadd.f32 %v518_v45, %v293_v48  ;;  %v2756_v52 = vadd.f32 %v591_v46, %v301_v49  ;;  %v520_v53 = vpop.f32.mrb[7].mxu1  ;;  %v593_v32 = vpop.f32.mrb[15].mxu0 }
 0x279   :  { %v2759_v56 = vadd.f32 %v520_v53, %v2720_v50  ;;  %v2762_v59 = vadd.f32 %v593_v32, %v2722_v51 }
 0x27b   :  { %3142 = vst [vmem:[#allocation12_spill] sm:$0xff] %v2759_v56  ;;  %3143 = vst [vmem:[#allocation13_spill] sm:$0xff] %v2762_v59 }
 0x27d   :  { %v524_v62 = vpop.f32.mrb[8].mxu1  ;;  %v597_v2 = vpop.f32.mrb[16].mxu0 }
 0x27e   :  { %v2764_v3 = vadd.f32 %v524_v62, %v293_v48  ;;  %v2766_v14 = vadd.f32 %v597_v2, %v301_v49  ;;  %v526_v15 = vpop.f32.mrb[9].mxu1  ;;  %v599_v20 = vpop.f32.mrb[17].mxu0 }
 0x27f   :  { %v2769_v42 = vadd.f32 %v526_v15, %v2720_v50  ;;  %v2772_v45 = vadd.f32 %v599_v20, %v2722_v51  ;;  %v528_v46 = vpop.f32.mrb[10].mxu1  ;;  %v601_v53 = vpop.f32.mrb[18].mxu0 }
 0x280   :  { %3144 = vst [vmem:[#allocation14_spill] sm:$0xff] %v2764_v3  ;;  %3145 = vst [vmem:[#allocation15_spill] sm:$0xff] %v2766_v14  ;;  %v2774_v0 = vadd.f32 %v528_v46, %v293_v48  ;;  %v2776_v32 = vadd.f32 %v601_v53, %v301_v49  ;;  %v530_v59 = vpop.f32.mrb[11].mxu1  ;;  %v603_v56 = vpop.f32.mrb[19].mxu0 }
 0x281   :  { %3146 = vst [vmem:[#allocation16_spill] sm:$0xff] %v2769_v42  ;;  %3147 = vst [vmem:[#allocation17_spill] sm:$0xff] %v2772_v45  ;;  %v2779_v62 = vadd.f32 %v530_v59, %v2720_v50  ;;  %v2782_v2 = vadd.f32 %v603_v56, %v2722_v51 }
 0x282   :  { %3148 = vst [vmem:[#allocation18_spill] sm:$0xff] %v2774_v0  ;;  %3149 = vst [vmem:[#allocation19_spill] sm:$0xff] %v2776_v32 }
 0x283   :  { %3150 = vst [vmem:[#allocation20_spill] sm:$0xff] %v2779_v62  ;;  %3151 = vst [vmem:[#allocation21_spill] sm:$0xff] %v2782_v2 }
 0x285   :  { %v534_v14 = vpop.f32.mrb[12].mxu1  ;;  %v607_v15 = vpop.f32.mrb[20].mxu0 }
 0x286   :  { %v2784_v42 = vadd.f32 %v534_v14, %v293_v48  ;;  %v2786_v20 = vadd.f32 %v607_v15, %v301_v49  ;;  %v536_v45 = vpop.f32.mrb[13].mxu1  ;;  %v609_v3 = vpop.f32.mrb[21].mxu0 }
 0x287   :  { %v2789_v46 = vadd.f32 %v536_v45, %v2720_v50  ;;  %v2792_v53 = vadd.f32 %v609_v3, %v2722_v51  ;;  %v538_v32 = vpop.f32.mrb[14].mxu1  ;;  %v611_v59 = vpop.f32.mrb[22].mxu0 }
 0x288   :  { %3152 = vst [vmem:[#allocation22_spill] sm:$0xff] %v2784_v42  ;;  %3153 = vst [vmem:[#allocation23_spill] sm:$0xff] %v2786_v20  ;;  %v2794_v62 = vadd.f32 %v538_v32, %v293_v48  ;;  %v2796_v56 = vadd.f32 %v611_v59, %v301_v49  ;;  %v540_v2 = vpop.f32.mrb[15].mxu1  ;;  %v613_v0 = vpop.f32.mrb[23].mxu0 }
 0x289   :  { %3154 = vst [vmem:[#allocation24_spill] sm:$0xff] %v2789_v46  ;;  %3155 = vst [vmem:[#allocation25_spill] sm:$0xff] %v2792_v53  ;;  %v2799_v14 = vadd.f32 %v540_v2, %v2720_v50  ;;  %v2802_v15 = vadd.f32 %v613_v0, %v2722_v51 }
 0x28a   :  { %3156 = vst [vmem:[#allocation26_spill] sm:$0xff] %v2796_v56 }
 0x28b   :  { %3157 = vst [vmem:[#allocation27_spill] sm:$0xff] %v2799_v14  ;;  %3158 = vst [vmem:[#allocation28_spill] sm:$0xff] %v2802_v15 }
 0x28d   :  { %v842_v20 = vpop.f32.mrb[16].mxu1  ;;  %v883_v45 = vpop.f32.mrb[24].mxu0 }
 0x28e   :  { %v890_v46 = vadd.f32 %v842_v20, %v2724_v54  ;;  %v892_v3 = vadd.f32 %v883_v45, %v2726_v55  ;;  %v844_v53 = vpop.f32.mrb[17].mxu1  ;;  %v885_v42 = vpop.f32.mrb[25].mxu0 }
 0x28f   :  { %v891_v48 = vadd.f32 %v844_v53, %v2729_v57  ;;  %v893_v49 = vadd.f32 %v885_v42, %v2732_v58  ;;  %v846_v32 = vpop.f32.mrb[18].mxu1  ;;  %v887_v59 = vpop.f32.mrb[26].mxu0 }
 0x290   :  { %v1941_v56 = vmul.f32 -1.442695, %v890_v46  ;;  %v847_v50 = vpop.f32.mrb[19].mxu1  ;;  %v888_v2 = vpop.f32.mrb[27].mxu0 }
 0x291   :  { %v1942_v14 = vmul.f32 -1.442695, %v891_v48  ;;  %v1943_v0 = vmul.f32 -1.442695, %v893_v49 }
 0x292   :  { %2172 = vpow2.f32 %v1941_v56 }
 0x293   :  { %2174 = vpow2.f32 %v1942_v14 }
 0x294   :  { %2176 = vpow2.f32 %v1943_v0 }
 0x295   :  { %2178 = vtanh.f32 %v892_v3  ;;  %v3159_v3 = vmov 0  }
 0x29c   :  { %v2173_v51 = vpop.eup %2172 }
 0x29d   :  { %v2175_v15 = vpop.eup %2174  ;;  %v897_v54 = vadd.f32 1.0, %v2173_v51 }
 0x29e   :  { %v903_v55 = vadd.f32 1.0, %v2175_v15  ;;  %v2177_v57 = vpop.eup %2176 }
 0x29f   :  { %2180 = vrcp.f32 %v897_v54  ;;  %v2179_v20 = vpop.eup %2178  ;;  %v910_v46 = vadd.f32 1.0, %v2177_v57 }
 0x2a0   :  { %2182 = vrcp.f32 %v903_v55 }
 0x2a1   :  { %2184 = vrcp.f32 %v910_v46 }
 0x2a9   :  { %v2181_v58 = vpop.eup %2180 }
 0x2aa   :  { %v2183_v42 = vpop.eup %2182  ;;  %v914_v53 = vmul.f32 %v2181_v58, %v2179_v20 }
 0x2ab   :  { %v913_v45 = vmul.f32 0.0, %v2183_v42  ;;  %v2185_v56 = vpop.eup %2184 }
 0x2ad   :  { %v2808_v32 = vadd.f32 %v914_v53, %v913_v45 }
 0x2af   :  { %2186 = vtanh.f32 %v2808_v32 }
 0x2b9   :  { %v2187_v14 = vpop.eup %2186 }
 0x2ba   :  { %v2811_v48 = vmul.f32 %v2187_v14, %v2185_v56 }
 0x2bc   :  { %v918_v15 = vpack.c.bf16 %v2811_v48, %v2811_v48 }
 0x2be   :  { %952 = vmatmul.mubr.bf16.vlgmr.msra.gmra.mrb[20].mxu1 %v918_v15  ;;  %993 = vmatmul.mubr.bf16.vlgmr.msra.gmra.mrb[28].mxu0 %v918_v15 }
 0x2bf   :  { %1031 = vmatpush1.bf16.msra.mxu1 %v2580_v4  ;;  %1072 = vmatpush1.bf16.msra.mxu0 %v2582_v5 }
 0x2c0   :  { %1032 = vmatprep.subr.bf16.mxu1 %v2584_v7  ;;  %1073 = vmatprep.subr.bf16.mxu0 %v2586_v8 }
 0x2c1   :  { %1062 = vmatprep.mubr.bf16.mxu1 %v3159_v3  ;;  %1103 = vmatprep.mubr.bf16.mxu0 %v3159_v3 }
 0x2c3   :  { %1033 = vmatpush1.bf16.msra.mxu1 %v2590_v9  ;;  %1074 = vmatpush1.bf16.msra.mxu0 %v2592_v10 }
 0x2c4   :  { %1034 = vmatprep.subr.bf16.mxu1 %v2596_v12  ;;  %1075 = vmatprep.subr.bf16.mxu0 %v2598_v13 }
 0x2c7   :  { %1035 = vmatpush1.bf16.msra.mxu1 %v2604_v18  ;;  %1076 = vmatpush1.bf16.msra.mxu0 %v2606_v19 }
 0x2c8   :  { %1036 = vmatprep.subr.bf16.mxu1 %v2610_v21  ;;  %1077 = vmatprep.subr.bf16.mxu0 %v2612_v22 }
 0x2cb   :  { %1037 = vmatpush1.bf16.msra.mxu1 %v2616_v23  ;;  %1078 = vmatpush1.bf16.msra.mxu0 %v2618_v24 }
 0x2cc   :  { %1038 = vmatprep.subr.bf16.mxu1 %v2622_v25  ;;  %1079 = vmatprep.subr.bf16.mxu0 %v2624_v26 }
 0x2cf   :  { %1039 = vmatpush1.bf16.msra.mxu1 %v2630_v27  ;;  %1080 = vmatpush1.bf16.msra.mxu0 %v2632_v28 }
 0x2d0   :  { %1040 = vmatprep.subr.bf16.mxu1 %v2636_v29  ;;  %1081 = vmatprep.subr.bf16.mxu0 %v2638_v30 }
 0x2d3   :  { %1041 = vmatpush1.bf16.msra.mxu1 %v2642_v31  ;;  %1082 = vmatpush1.bf16.msra.mxu0 %v2644_v33 }
 0x2d4   :  { %1042 = vmatprep.subr.bf16.mxu1 %v2648_v34  ;;  %1083 = vmatprep.subr.bf16.mxu0 %v2650_v35 }
 0x2d7   :  { %1043 = vmatpush1.bf16.msra.mxu1 %v2656_v36  ;;  %1084 = vmatpush1.bf16.msra.mxu0 %v2658_v37 }
 0x2d8   :  { %1044 = vmatprep.subr.bf16.mxu1 %v2662_v38  ;;  %1085 = vmatprep.subr.bf16.mxu0 %v2664_v39 }
 0x2db   :  { %1045 = vmatpush1.bf16.msra.mxu1 %v2668_v40  ;;  %1086 = vmatpush1.bf16.msra.mxu0 %v2670_v41 }
 0x2dc   :  { %1141 = vmatprep.subr.bf16.mxu1 %v2574_v60  ;;  %1182 = vmatprep.subr.bf16.mxu0 %v2576_v61 }
 0x391   :  { %v953_v49 = vpop.f32.mrb[20].mxu1  ;;  %v994_v59 = vpop.f32.mrb[28].mxu0 }
 0x392   :  { %v1001_v50 = vadd.f32 %v953_v49, %v2734_v63  ;;  %v1003_v2 = vadd.f32 %v994_v59, %v2736_v1  ;;  %v955_v0 = vpop.f32.mrb[21].mxu1  ;;  %v996_v51 = vpop.f32.mrb[29].mxu0 }
 0x393   :  { %v1002_v54 = vadd.f32 %v955_v0, %v2739_v6  ;;  %v1004_v55 = vadd.f32 %v996_v51, %v2742_v11  ;;  %v957_v57 = vpop.f32.mrb[22].mxu1  ;;  %v998_v20 = vpop.f32.mrb[30].mxu0 }
 0x394   :  { %v1944_v58 = vmul.f32 -1.442695, %v1001_v50  ;;  %v958_v42 = vpop.f32.mrb[23].mxu1  ;;  %v999_v53 = vpop.f32.mrb[31].mxu0 }
 0x395   :  { %v1945_v46 = vmul.f32 -1.442695, %v1002_v54  ;;  %v1946_v45 = vmul.f32 -1.442695, %v1004_v55 }
 0x396   :  { %2188 = vpow2.f32 %v1944_v58 }
 0x397   :  { %2190 = vpow2.f32 %v1945_v46 }
 0x398   :  { %2192 = vpow2.f32 %v1946_v45 }
 0x399   :  { %2194 = vtanh.f32 %v1003_v2 }
 0x3a0   :  { %v2189_v56 = vpop.eup %2188 }
 0x3a1   :  { %v2191_v14 = vpop.eup %2190  ;;  %v1008_v63 = vadd.f32 1.0, %v2189_v56 }
 0x3a2   :  { %v1014_v1 = vadd.f32 1.0, %v2191_v14  ;;  %v2193_v6 = vpop.eup %2192 }
 0x3a3   :  { %2196 = vrcp.f32 %v1008_v63  ;;  %v2195_v15 = vpop.eup %2194  ;;  %v1021_v50 = vadd.f32 1.0, %v2193_v6 }
 0x3a4   :  { %2198 = vrcp.f32 %v1014_v1 }
 0x3a5   :  { %2200 = vrcp.f32 %v1021_v50 }
 0x3ad   :  { %v2197_v11 = vpop.eup %2196 }
 0x3ae   :  { %v2199_v49 = vpop.eup %2198  ;;  %v1025_v59 = vmul.f32 %v2197_v11, %v2195_v15 }
 0x3af   :  { %v1024_v0 = vmul.f32 %v2199_v49, %v2808_v32  ;;  %v2201_v54 = vpop.eup %2200 }
 0x3b1   :  { %v2854_v51 = vadd.f32 %v1025_v59, %v1024_v0 }
 0x3b3   :  { %2202 = vtanh.f32 %v2854_v51 }
 0x3bd   :  { %v2203_v55 = vpop.eup %2202 }
 0x3be   :  { %v2857_v57 = vmul.f32 %v2203_v55, %v2201_v54 }
 0x3c0   :  { %v1029_v2 = vpack.c.bf16 %v2857_v57, %v2857_v57 }
 0x3c2   :  { %1063 = vmatmul.mubr.bf16.vlgmr.msra.gmra.mrb[24].mxu1 %v1029_v2  ;;  %1104 = vmatmul.mubr.bf16.vlgmr.msra.gmra.mrb[32].mxu0 %v1029_v2 }
 0x3c3   :  { %1142 = vmatpush1.bf16.msra.mxu1 %v2580_v4  ;;  %1183 = vmatpush1.bf16.msra.mxu0 %v2582_v5 }
 0x3c4   :  { %1143 = vmatprep.subr.bf16.mxu1 %v2584_v7  ;;  %1184 = vmatprep.subr.bf16.mxu0 %v2586_v8 }
 0x3c5   :  { %1173 = vmatprep.mubr.bf16.mxu1 %v3159_v3  ;;  %1214 = vmatprep.mubr.bf16.mxu0 %v3159_v3 }
 0x3c7   :  { %1144 = vmatpush1.bf16.msra.mxu1 %v2590_v9  ;;  %1185 = vmatpush1.bf16.msra.mxu0 %v2592_v10 }
 0x3c8   :  { %1145 = vmatprep.subr.bf16.mxu1 %v2596_v12  ;;  %1186 = vmatprep.subr.bf16.mxu0 %v2598_v13 }
 0x3cb   :  { %1146 = vmatpush1.bf16.msra.mxu1 %v2604_v18  ;;  %1187 = vmatpush1.bf16.msra.mxu0 %v2606_v19 }
 0x3cc   :  { %1147 = vmatprep.subr.bf16.mxu1 %v2610_v21  ;;  %1188 = vmatprep.subr.bf16.mxu0 %v2612_v22 }
 0x3cf   :  { %1148 = vmatpush1.bf16.msra.mxu1 %v2616_v23  ;;  %1189 = vmatpush1.bf16.msra.mxu0 %v2618_v24 }
 0x3d0   :  { %1149 = vmatprep.subr.bf16.mxu1 %v2622_v25  ;;  %1190 = vmatprep.subr.bf16.mxu0 %v2624_v26 }
 0x3d3   :  { %1150 = vmatpush1.bf16.msra.mxu1 %v2630_v27  ;;  %1191 = vmatpush1.bf16.msra.mxu0 %v2632_v28 }
 0x3d4   :  { %1151 = vmatprep.subr.bf16.mxu1 %v2636_v29  ;;  %1192 = vmatprep.subr.bf16.mxu0 %v2638_v30 }
 0x3d7   :  { %1152 = vmatpush1.bf16.msra.mxu1 %v2642_v31  ;;  %1193 = vmatpush1.bf16.msra.mxu0 %v2644_v33 }
 0x3d8   :  { %1153 = vmatprep.subr.bf16.mxu1 %v2648_v34  ;;  %1194 = vmatprep.subr.bf16.mxu0 %v2650_v35 }
 0x3db   :  { %1154 = vmatpush1.bf16.msra.mxu1 %v2656_v36  ;;  %1195 = vmatpush1.bf16.msra.mxu0 %v2658_v37 }
 0x3dc   :  { %1155 = vmatprep.subr.bf16.mxu1 %v2662_v38  ;;  %1196 = vmatprep.subr.bf16.mxu0 %v2664_v39 }
 0x3df   :  { %1156 = vmatpush1.bf16.msra.mxu1 %v2668_v40  ;;  %1197 = vmatpush1.bf16.msra.mxu0 %v2670_v41 }
 0x3e0   :  { %1252 = vmatprep.subr.bf16.mxu1 %v2574_v60  ;;  %1293 = vmatprep.subr.bf16.mxu0 %v2576_v61 }
 0x495   :  { %v1064_v32 = vpop.f32.mrb[24].mxu1  ;;  %v1105_v20 = vpop.f32.mrb[32].mxu0 }
 0x496   :  { %v1112_v58 = vadd.f32 %v1064_v32, %v2744_v16  ;;  %v1114_v42 = vadd.f32 %v1105_v20, %v2746_v17  ;;  %v1066_v53 = vpop.f32.mrb[25].mxu1  ;;  %v1107_v46 = vpop.f32.mrb[33].mxu0 }
 0x497   :  { %v1113_v45 = vadd.f32 %v1066_v53, %v2749_v43  ;;  %v1115_v56 = vadd.f32 %v1107_v46, %v2752_v44  ;;  %v1068_v14 = vpop.f32.mrb[26].mxu1  ;;  %v1109_v63 = vpop.f32.mrb[34].mxu0 }
 0x498   :  { %v1947_v1 = vmul.f32 -1.442695, %v1112_v58  ;;  %v1069_v6 = vpop.f32.mrb[27].mxu1  ;;  %v1110_v15 = vpop.f32.mrb[35].mxu0 }
 0x499   :  { %v1948_v11 = vmul.f32 -1.442695, %v1113_v45  ;;  %v1949_v49 = vmul.f32 -1.442695, %v1115_v56  ;;  %v3160_v6 = vld [vmem:[#allocation12_spill] sm:$0xff] }
 0x49a   :  { %2204 = vpow2.f32 %v1947_v1 }
 0x49b   :  { %2206 = vpow2.f32 %v1948_v11  ;;  %v3161_v11 = vld [vmem:[#allocation13_spill] sm:$0xff] }
 0x49c   :  { %2208 = vpow2.f32 %v1949_v49 }
 0x49d   :  { %2210 = vtanh.f32 %v1114_v42 }
 0x4a4   :  { %v2205_v59 = vpop.eup %2204 }
 0x4a5   :  { %v2207_v50 = vpop.eup %2206  ;;  %v1119_v16 = vadd.f32 1.0, %v2205_v59 }
 0x4a6   :  { %v1125_v17 = vadd.f32 1.0, %v2207_v50  ;;  %v2209_v43 = vpop.eup %2208 }
 0x4a7   :  { %2212 = vrcp.f32 %v1119_v16  ;;  %v2211_v0 = vpop.eup %2210  ;;  %v1132_v2 = vadd.f32 1.0, %v2209_v43 }
 0x4a8   :  { %2214 = vrcp.f32 %v1125_v17 }
 0x4a9   :  { %2216 = vrcp.f32 %v1132_v2 }
 0x4b1   :  { %v2213_v44 = vpop.eup %2212 }
 0x4b2   :  { %v2215_v54 = vpop.eup %2214  ;;  %v1136_v55 = vmul.f32 %v2213_v44, %v2211_v0 }
 0x4b3   :  { %v1135_v32 = vmul.f32 %v2215_v54, %v2854_v51  ;;  %v2217_v58 = vpop.eup %2216 }
 0x4b5   :  { %v2900_v20 = vadd.f32 %v1136_v55, %v1135_v32 }
 0x4b7   :  { %2218 = vtanh.f32 %v2900_v20 }
 0x4c1   :  { %v2219_v53 = vpop.eup %2218 }
 0x4c2   :  { %v2903_v46 = vmul.f32 %v2219_v53, %v2217_v58 }
 0x4c4   :  { %v1140_v42 = vpack.c.bf16 %v2903_v46, %v2903_v46 }
 0x4c6   :  { %1174 = vmatmul.mubr.bf16.vlgmr.msra.gmra.mrb[28].mxu1 %v1140_v42  ;;  %1215 = vmatmul.mubr.bf16.vlgmr.msra.gmra.mrb[36].mxu0 %v1140_v42 }
 0x4c7   :  { %1253 = vmatpush1.bf16.msra.mxu1 %v2580_v4  ;;  %1294 = vmatpush1.bf16.msra.mxu0 %v2582_v5 }
 0x4c8   :  { %1254 = vmatprep.subr.bf16.mxu1 %v2584_v7  ;;  %1295 = vmatprep.subr.bf16.mxu0 %v2586_v8 }
 0x4c9   :  { %1284 = vmatprep.mubr.bf16.mxu1 %v3159_v3  ;;  %1325 = vmatprep.mubr.bf16.mxu0 %v3159_v3 }
 0x4cb   :  { %1255 = vmatpush1.bf16.msra.mxu1 %v2590_v9  ;;  %1296 = vmatpush1.bf16.msra.mxu0 %v2592_v10 }
 0x4cc   :  { %1256 = vmatprep.subr.bf16.mxu1 %v2596_v12  ;;  %1297 = vmatprep.subr.bf16.mxu0 %v2598_v13 }
 0x4cf   :  { %1257 = vmatpush1.bf16.msra.mxu1 %v2604_v18  ;;  %1298 = vmatpush1.bf16.msra.mxu0 %v2606_v19 }
 0x4d0   :  { %1258 = vmatprep.subr.bf16.mxu1 %v2610_v21  ;;  %1299 = vmatprep.subr.bf16.mxu0 %v2612_v22 }
 0x4d3   :  { %1259 = vmatpush1.bf16.msra.mxu1 %v2616_v23  ;;  %1300 = vmatpush1.bf16.msra.mxu0 %v2618_v24 }
 0x4d4   :  { %1260 = vmatprep.subr.bf16.mxu1 %v2622_v25  ;;  %1301 = vmatprep.subr.bf16.mxu0 %v2624_v26 }
 0x4d7   :  { %1261 = vmatpush1.bf16.msra.mxu1 %v2630_v27  ;;  %1302 = vmatpush1.bf16.msra.mxu0 %v2632_v28 }
 0x4d8   :  { %1262 = vmatprep.subr.bf16.mxu1 %v2636_v29  ;;  %1303 = vmatprep.subr.bf16.mxu0 %v2638_v30 }
 0x4db   :  { %1263 = vmatpush1.bf16.msra.mxu1 %v2642_v31  ;;  %1304 = vmatpush1.bf16.msra.mxu0 %v2644_v33 }
 0x4dc   :  { %1264 = vmatprep.subr.bf16.mxu1 %v2648_v34  ;;  %1305 = vmatprep.subr.bf16.mxu0 %v2650_v35 }
 0x4df   :  { %1265 = vmatpush1.bf16.msra.mxu1 %v2656_v36  ;;  %1306 = vmatpush1.bf16.msra.mxu0 %v2658_v37 }
 0x4e0   :  { %1266 = vmatprep.subr.bf16.mxu1 %v2662_v38  ;;  %1307 = vmatprep.subr.bf16.mxu0 %v2664_v39 }
 0x4e3   :  { %1267 = vmatpush1.bf16.msra.mxu1 %v2668_v40  ;;  %1308 = vmatpush1.bf16.msra.mxu0 %v2670_v41 }
 0x4e4   :  { %1363 = vmatprep.subr.bf16.mxu1 %v2574_v60  ;;  %1404 = vmatprep.subr.bf16.mxu0 %v2576_v61 }
 0x599   :  { %v1175_v51 = vpop.f32.mrb[28].mxu1  ;;  %v1216_v45 = vpop.f32.mrb[36].mxu0 }
 0x59a   :  { %v1223_v56 = vadd.f32 %v1175_v51, %v2754_v47  ;;  %v1225_v14 = vadd.f32 %v1216_v45, %v2756_v52  ;;  %v1177_v63 = vpop.f32.mrb[29].mxu1  ;;  %v1218_v1 = vpop.f32.mrb[37].mxu0 }
 0x59b   :  { %v1224_v15 = vadd.f32 %v1177_v63, %v3160_v6  ;;  %v1226_v49 = vadd.f32 %v1218_v1, %v3161_v11  ;;  %v1179_v59 = vpop.f32.mrb[30].mxu1  ;;  %v1220_v50 = vpop.f32.mrb[38].mxu0 }
 0x59c   :  { %v1950_v16 = vmul.f32 -1.442695, %v1223_v56  ;;  %v1180_v17 = vpop.f32.mrb[31].mxu1  ;;  %v1221_v43 = vpop.f32.mrb[39].mxu0 }
 0x59d   :  { %v1951_v0 = vmul.f32 -1.442695, %v1224_v15  ;;  %v1952_v44 = vmul.f32 -1.442695, %v1226_v49 }
 0x59e   :  { %2220 = vpow2.f32 %v1950_v16 }
 0x59f   :  { %2222 = vpow2.f32 %v1951_v0 }
 0x5a0   :  { %2224 = vpow2.f32 %v1952_v44 }
 0x5a1   :  { %2226 = vtanh.f32 %v1225_v14 }
 0x5a8   :  { %v2221_v54 = vpop.eup %2220 }
 0x5a9   :  { %v2223_v55 = vpop.eup %2222  ;;  %v1230_v47 = vadd.f32 1.0, %v2221_v54 }
 0x5aa   :  { %v1236_v52 = vadd.f32 1.0, %v2223_v55  ;;  %v2225_v2 = vpop.eup %2224 }
 0x5ab   :  { %2228 = vrcp.f32 %v1230_v47  ;;  %v2227_v32 = vpop.eup %2226  ;;  %v1243_v51 = vadd.f32 1.0, %v2225_v2 }
 0x5ac   :  { %2230 = vrcp.f32 %v1236_v52 }
 0x5ad   :  { %2232 = vrcp.f32 %v1243_v51  ;;  %v3008_v51 = vld [vmem:[#allocation5 + $0x2c] ss:$16 sps:$4 sm:$0xff]  }
 0x5b5   :  { %v2229_v58 = vpop.eup %2228 }
 0x5b6   :  { %v2231_v53 = vpop.eup %2230  ;;  %v1247_v42 = vmul.f32 %v2229_v58, %v2227_v32  ;;  %v2999_v58 = vld [vmem:[#allocation5] ss:$16 sps:$4 sm:$0xff]  }
 0x5b7   :  { %v1246_v45 = vmul.f32 %v2231_v53, %v2900_v20  ;;  %v2233_v63 = vpop.eup %2232  ;;  %v3002_v53 = vld [vmem:[#allocation5 + $0x8] ss:$16 sps:$4 sm:$0xff]  }
 0x5b9   :  { %v2946_v56 = vadd.f32 %v1247_v42, %v1246_v45  ;;  %v3005_v42 = vld [vmem:[#allocation5 + $0x24] ss:$16 sps:$4 sm:$0xff]   ;;  %v3013_v45 = vld [vmem:[#allocation5 + $0x20] ss:$16 sps:$4 sm:$0xff]  }
 0x5bb   :  { %2234 = vtanh.f32 %v2946_v56 }
 0x5c5   :  { %v2235_v1 = vpop.eup %2234 }
 0x5c6   :  { %v2949_v6 = vmul.f32 %v2235_v1, %v2233_v63  ;;  %v3019_v63 = vld [vmem:[#allocation5 + $0x44] ss:$16 sps:$4 sm:$0xff]   ;;  %v3022_v1 = vld [vmem:[#allocation5 + $0x4c] ss:$16 sps:$4 sm:$0xff]  }
 0x5c8   :  { %v1251_v14 = vpack.c.bf16 %v2949_v6, %v2949_v6 }
 0x5ca   :  { %1285 = vmatmul.mubr.bf16.vlgmr.msra.gmra.mrb[32].mxu1 %v1251_v14  ;;  %1326 = vmatmul.mubr.bf16.vlgmr.msra.gmra.mrb[40].mxu0 %v1251_v14  ;;  %v3025_v14 = vld [vmem:[#allocation5 + $0x40] ss:$16 sps:$4 sm:$0xff]  }
 0x5cb   :  { %1364 = vmatpush1.bf16.msra.mxu1 %v2580_v4  ;;  %1405 = vmatpush1.bf16.msra.mxu0 %v2582_v5 }
 0x5cc   :  { %1365 = vmatprep.subr.bf16.mxu1 %v2584_v7  ;;  %1406 = vmatprep.subr.bf16.mxu0 %v2586_v8  ;;  %v3162_v7 = vld [vmem:[#allocation14_spill] sm:$0xff] }
 0x5cd   :  { %1395 = vmatprep.mubr.bf16.mxu1 %v3159_v3  ;;  %1436 = vmatprep.mubr.bf16.mxu0 %v3159_v3 }
 0x5cf   :  { %1366 = vmatpush1.bf16.msra.mxu1 %v2590_v9  ;;  %1407 = vmatpush1.bf16.msra.mxu0 %v2592_v10  ;;  %v3163_v9 = vld [vmem:[#allocation15_spill] sm:$0xff] }
 0x5d0   :  { %1367 = vmatprep.subr.bf16.mxu1 %v2596_v12  ;;  %1408 = vmatprep.subr.bf16.mxu0 %v2598_v13 }
 0x5d3   :  { %1368 = vmatpush1.bf16.msra.mxu1 %v2604_v18  ;;  %1409 = vmatpush1.bf16.msra.mxu0 %v2606_v19  ;;  %v3164_v18 = vld [vmem:[#allocation16_spill] sm:$0xff] }
 0x5d4   :  { %1369 = vmatprep.subr.bf16.mxu1 %v2610_v21  ;;  %1410 = vmatprep.subr.bf16.mxu0 %v2612_v22  ;;  %v3165_v21 = vld [vmem:[#allocation17_spill] sm:$0xff] }
 0x5d7   :  { %1370 = vmatpush1.bf16.msra.mxu1 %v2616_v23  ;;  %1411 = vmatpush1.bf16.msra.mxu0 %v2618_v24 }
 0x5d8   :  { %1371 = vmatprep.subr.bf16.mxu1 %v2622_v25  ;;  %1412 = vmatprep.subr.bf16.mxu0 %v2624_v26 }
 0x5db   :  { %1372 = vmatpush1.bf16.msra.mxu1 %v2630_v27  ;;  %1413 = vmatpush1.bf16.msra.mxu0 %v2632_v28 }
 0x5dc   :  { %1373 = vmatprep.subr.bf16.mxu1 %v2636_v29  ;;  %1414 = vmatprep.subr.bf16.mxu0 %v2638_v30 }
 0x5df   :  { %1374 = vmatpush1.bf16.msra.mxu1 %v2642_v31  ;;  %1415 = vmatpush1.bf16.msra.mxu0 %v2644_v33 }
 0x5e0   :  { %1375 = vmatprep.subr.bf16.mxu1 %v2648_v34  ;;  %1416 = vmatprep.subr.bf16.mxu0 %v2650_v35 }
 0x5e3   :  { %1376 = vmatpush1.bf16.msra.mxu1 %v2656_v36  ;;  %1417 = vmatpush1.bf16.msra.mxu0 %v2658_v37 }
 0x5e4   :  { %1377 = vmatprep.subr.bf16.mxu1 %v2662_v38  ;;  %1418 = vmatprep.subr.bf16.mxu0 %v2664_v39 }
 0x5e7   :  { %1378 = vmatpush1.bf16.msra.mxu1 %v2668_v40  ;;  %1419 = vmatpush1.bf16.msra.mxu0 %v2670_v41 }
 0x5e8   :  { %1474 = vmatprep.subr.bf16.mxu1 %v2574_v60  ;;  %1515 = vmatprep.subr.bf16.mxu0 %v2576_v61 }
 0x69d   :  { %v1286_v4 = vpop.f32.mrb[32].mxu1  ;;  %v1327_v5 = vpop.f32.mrb[40].mxu0 }
 0x69e   :  { %v1334_v8 = vadd.f32 %v1286_v4, %v3162_v7  ;;  %v1336_v10 = vadd.f32 %v1327_v5, %v3163_v9  ;;  %v1288_v12 = vpop.f32.mrb[33].mxu1  ;;  %v1329_v13 = vpop.f32.mrb[41].mxu0  ;;  %v3028_v4 = vld [vmem:[#allocation5 + $0x48] ss:$16 sps:$4 sm:$0xff]   ;;  %v3031_v5 = vld [vmem:[#allocation5 + $0x64] ss:$16 sps:$4 sm:$0xff]  }
 0x69f   :  { %v1335_v19 = vadd.f32 %v1288_v12, %v3164_v18  ;;  %v1337_v22 = vadd.f32 %v1329_v13, %v3165_v21  ;;  %v1290_v23 = vpop.f32.mrb[34].mxu1  ;;  %v1331_v24 = vpop.f32.mrb[42].mxu0  ;;  %v3034_v7 = vld [vmem:[#allocation5 + $0x6c] ss:$16 sps:$4 sm:$0xff]   ;;  %v3040_v9 = vld [vmem:[#allocation5 + $0x68] ss:$16 sps:$4 sm:$0xff]  }
 0x6a0   :  { %v1953_v25 = vmul.f32 -1.442695, %v1334_v8  ;;  %v1291_v26 = vpop.f32.mrb[35].mxu1  ;;  %v1332_v20 = vpop.f32.mrb[43].mxu0  ;;  %v3037_v8 = vld [vmem:[#allocation5 + $0x60] ss:$16 sps:$4 sm:$0xff]  }
 0x6a1   :  { %v1954_v60 = vmul.f32 -1.442695, %v1335_v19  ;;  %v1955_v61 = vmul.f32 -1.442695, %v1337_v22  ;;  %v3046_v12 = vld [vmem:[#allocation5 + $0x8c] ss:$16 sps:$4 sm:$0xff]  }
 0x6a2   :  { %2236 = vpow2.f32 %v1953_v25  ;;  %v3168_v13 = vld [vmem:[#allocation20_spill] sm:$0xff]  ;;  %v3169_v18 = vld [vmem:[#allocation21_spill] sm:$0xff] }
 0x6a3   :  { %2238 = vpow2.f32 %v1954_v60 }
 0x6a4   :  { %2240 = vpow2.f32 %v1955_v61 }
 0x6a5   :  { %2242 = vtanh.f32 %v1336_v10  ;;  %v3043_v10 = vld [vmem:[#allocation5 + $0x84] ss:$16 sps:$4 sm:$0xff]  }
 0x6ac   :  { %v2237_v15 = vpop.eup %2236 }
 0x6ad   :  { %v2239_v11 = vpop.eup %2238  ;;  %v1341_v49 = vadd.f32 1.0, %v2237_v15 }
 0x6ae   :  { %v1347_v59 = vadd.f32 1.0, %v2239_v11  ;;  %v2241_v50 = vpop.eup %2240 }
 0x6af   :  { %2244 = vrcp.f32 %v1341_v49  ;;  %v2243_v16 = vpop.eup %2242  ;;  %v1354_v44 = vadd.f32 1.0, %v2241_v50 }
 0x6b0   :  { %2246 = vrcp.f32 %v1347_v59 }
 0x6b1   :  { %2248 = vrcp.f32 %v1354_v44 }
 0x6b9   :  { %v2245_v17 = vpop.eup %2244 }
 0x6ba   :  { %v2247_v43 = vpop.eup %2246  ;;  %v1358_v0 = vmul.f32 %v2245_v17, %v2243_v16 }
 0x6bb   :  { %v1357_v54 = vmul.f32 %v2247_v43, %v2946_v56  ;;  %v2249_v47 = vpop.eup %2248  ;;  %v3016_v56 = vld [vmem:[#allocation5 + $0x28] ss:$16 sps:$4 sm:$0xff]  }
 0x6bd   :  { %v2992_v55 = vadd.f32 %v1358_v0, %v1357_v54 }
 0x6bf   :  { %2250 = vtanh.f32 %v2992_v55 }
 0x6c9   :  { %v2251_v52 = vpop.eup %2250 }
 0x6ca   :  { %v2995_v2 = vmul.f32 %v2251_v52, %v2249_v47  ;;  %v2320_v47 = vld [vmem:[#allocation5 + $0xa4] ss:$16 sps:$4 sm:$0xff]   ;;  %v2321_v52 = vld [vmem:[#allocation5 + $0xac] ss:$16 sps:$4 sm:$0xff]  }
 0x6cc   :  { %v1362_v32 = vpack.c.bf16 %v2995_v2, %v2995_v2 }
 0x6ce   :  { %1396 = vmatmul.mubr.bf16.vlgmr.msra.gmra.mrb[36].mxu1 %v1362_v32  ;;  %1437 = vmatmul.mubr.bf16.vlgmr.msra.gmra.mrb[44].mxu0 %v1362_v32  ;;  %v2322_v32 = vld [vmem:[#allocation5 + $0xa0] ss:$16 sps:$4 sm:$0xff]  }
 0x6cf   :  { %1475 = vmatpush1.bf16.msra.mxu1 %v2999_v58  ;;  %1516 = vmatpush1.bf16.msra.mxu0 %v3002_v53 }
 0x6d0   :  { %1476 = vmatprep.subr.bf16.mxu1 %v3005_v42  ;;  %1517 = vmatprep.subr.bf16.mxu0 %v3008_v51 }
 0x6d1   :  { %1506 = vmatprep.mubr.bf16.mxu1 %v3159_v3  ;;  %1547 = vmatprep.mubr.bf16.mxu0 %v3159_v3 }
 0x6d3   :  { %1477 = vmatpush1.bf16.msra.mxu1 %v3013_v45  ;;  %1518 = vmatpush1.bf16.msra.mxu0 %v3016_v56 }
 0x6d4   :  { %1478 = vmatprep.subr.bf16.mxu1 %v3019_v63  ;;  %1519 = vmatprep.subr.bf16.mxu0 %v3022_v1 }
 0x6d7   :  { %1479 = vmatpush1.bf16.msra.mxu1 %v3025_v14  ;;  %1520 = vmatpush1.bf16.msra.mxu0 %v3028_v4 }
 0x6d8   :  { %1480 = vmatprep.subr.bf16.mxu1 %v3031_v5  ;;  %1521 = vmatprep.subr.bf16.mxu0 %v3034_v7 }
 0x6db   :  { %1481 = vmatpush1.bf16.msra.mxu1 %v3037_v8  ;;  %1522 = vmatpush1.bf16.msra.mxu0 %v3040_v9 }
 0x6dc   :  { %1482 = vmatprep.subr.bf16.mxu1 %v3043_v10  ;;  %1523 = vmatprep.subr.bf16.mxu0 %v3046_v12 }
 0x6df   :  { %1483 = vmatpush1.bf16.msra.mxu1 %v2630_v27  ;;  %1524 = vmatpush1.bf16.msra.mxu0 %v2632_v28  ;;  %v2316_v27 = vld [vmem:[#allocation5 + $0x4] ss:$16 sps:$4 sm:$0xff]   ;;  %v2317_v28 = vld [vmem:[#allocation5 + $0xc] ss:$16 sps:$4 sm:$0xff]  }
 0x6e0   :  { %1484 = vmatprep.subr.bf16.mxu1 %v2636_v29  ;;  %1525 = vmatprep.subr.bf16.mxu0 %v2638_v30 }
 0x6e3   :  { %1485 = vmatpush1.bf16.msra.mxu1 %v2642_v31  ;;  %1526 = vmatpush1.bf16.msra.mxu0 %v2644_v33  ;;  %v3166_v31 = vld [vmem:[#allocation18_spill] sm:$0xff] }
 0x6e4   :  { %1486 = vmatprep.subr.bf16.mxu1 %v2648_v34  ;;  %1527 = vmatprep.subr.bf16.mxu0 %v2650_v35  ;;  %v3167_v34 = vld [vmem:[#allocation19_spill] sm:$0xff] }
 0x6e7   :  { %1487 = vmatpush1.bf16.msra.mxu1 %v2656_v36  ;;  %1528 = vmatpush1.bf16.msra.mxu0 %v2658_v37 }
 0x6e8   :  { %1488 = vmatprep.subr.bf16.mxu1 %v2662_v38  ;;  %1529 = vmatprep.subr.bf16.mxu0 %v2664_v39 }
 0x6eb   :  { %1489 = vmatpush1.bf16.msra.mxu1 %v2668_v40  ;;  %1530 = vmatpush1.bf16.msra.mxu0 %v2670_v41 }
 0x6ec   :  { %1585 = vmatprep.subr.bf16.mxu1 %v2316_v27  ;;  %1626 = vmatprep.subr.bf16.mxu0 %v2317_v28 }
 0x7a1   :  { %v1397_v29 = vpop.f32.mrb[36].mxu1  ;;  %v1438_v30 = vpop.f32.mrb[44].mxu0 }
 0x7a2   :  { %v1445_v33 = vadd.f32 %v1397_v29, %v3166_v31  ;;  %v1447_v35 = vadd.f32 %v1438_v30, %v3167_v34  ;;  %v1399_v36 = vpop.f32.mrb[37].mxu1  ;;  %v1440_v37 = vpop.f32.mrb[45].mxu0  ;;  %v3172_v29 = vld [vmem:[#allocation24_spill] sm:$0xff]  ;;  %v3173_v31 = vld [vmem:[#allocation25_spill] sm:$0xff] }
 0x7a3   :  { %v1446_v38 = vadd.f32 %v1399_v36, %v3168_v13  ;;  %v1448_v39 = vadd.f32 %v1440_v37, %v3169_v18  ;;  %v1401_v19 = vpop.f32.mrb[38].mxu1  ;;  %v1442_v40 = vpop.f32.mrb[46].mxu0 }
 0x7a4   :  { %v1956_v21 = vmul.f32 -1.442695, %v1445_v33  ;;  %v1402_v41 = vpop.f32.mrb[39].mxu1  ;;  %v1443_v22 = vpop.f32.mrb[47].mxu0 }
 0x7a5   :  { %v1957_v23 = vmul.f32 -1.442695, %v1446_v38  ;;  %v1958_v24 = vmul.f32 -1.442695, %v1448_v39 }
 0x7a6   :  { %2252 = vpow2.f32 %v1956_v21 }
 0x7a7   :  { %2254 = vpow2.f32 %v1957_v23 }
 0x7a8   :  { %2256 = vpow2.f32 %v1958_v24 }
 0x7a9   :  { %2258 = vtanh.f32 %v1447_v35 }
 0x7b0   :  { %v2253_v25 = vpop.eup %2252 }
 0x7b1   :  { %v2255_v26 = vpop.eup %2254  ;;  %v1452_v20 = vadd.f32 1.0, %v2253_v25 }
 0x7b2   :  { %v1458_v60 = vadd.f32 1.0, %v2255_v26  ;;  %v2257_v61 = vpop.eup %2256 }
 0x7b3   :  { %2260 = vrcp.f32 %v1452_v20  ;;  %v2259_v15 = vpop.eup %2258  ;;  %v1465_v50 = vadd.f32 1.0, %v2257_v61 }
 0x7b4   :  { %2262 = vrcp.f32 %v1458_v60 }
 0x7b5   :  { %2264 = vrcp.f32 %v1465_v50  ;;  %v1695_v50 = vpack.c.bf16 %v2857_v57, %v2811_v48  ;;  %v2171_v48 = vld [vmem:[#allocation7 + $0x38] sm:$0xff]   ;;  %v1696_v57 = vpack.c.bf16 %v2949_v6, %v2903_v46 }
 0x7bd   :  { %v2261_v11 = vpop.eup %2260 }
 0x7be   :  { %v2263_v49 = vpop.eup %2262  ;;  %v1469_v59 = vmul.f32 %v2261_v11, %v2259_v15 }
 0x7bf   :  { %v1468_v16 = vmul.f32 %v2263_v49, %v2992_v55  ;;  %v2265_v43 = vpop.eup %2264  ;;  %v2319_v55 = vld [vmem:[#allocation5 + $0x88] ss:$16 sps:$4 sm:$0xff]  }
 0x7c1   :  { %v3068_v17 = vadd.f32 %v1469_v59, %v1468_v16  ;;  %v2165_v59 = vld [vmem:[#allocation7 + $0x8] sm:$0xff]   ;;  %v2166_v16 = vld [vmem:[#allocation7 + $0x10] sm:$0xff]  }
 0x7c3   :  { %2266 = vtanh.f32 %v3068_v17 }
 0x7cd   :  { %v2267_v0 = vpop.eup %2266 }
 0x7ce   :  { %v3071_v44 = vmul.f32 %v2267_v0, %v2265_v43  ;;  %v2168_v43 = vld [vmem:[#allocation7 + $0x20] sm:$0xff]   ;;  %v2169_v0 = vld [vmem:[#allocation7 + $0x28] sm:$0xff]  }
 0x7d0   :  { %v1473_v54 = vpack.c.bf16 %v3071_v44, %v3071_v44 }
 0x7d2   :  { %1507 = vmatmul.mubr.bf16.vlgmr.msra.gmra.mrb[40].mxu1 %v1473_v54  ;;  %1548 = vmatmul.mubr.bf16.vlgmr.msra.gmra.mrb[48].mxu0 %v1473_v54  ;;  %v2170_v54 = vld [vmem:[#allocation7 + $0x30] sm:$0xff]  }
 0x7d3   :  { %1586 = vmatpush1.bf16.msra.mxu1 %v2999_v58  ;;  %1627 = vmatpush1.bf16.msra.mxu0 %v3002_v53  ;;  %v2323_v58 = vld [vmem:[#allocation5 + $0xa8] ss:$16 sps:$4 sm:$0xff]   ;;  %v2324_v53 = vld [vmem:[#allocation5 + $0xc4] ss:$16 sps:$4 sm:$0xff]  }
 0x7d4   :  { %1587 = vmatprep.subr.bf16.mxu1 %v3005_v42  ;;  %1628 = vmatprep.subr.bf16.mxu0 %v3008_v51  ;;  %v2325_v42 = vld [vmem:[#allocation5 + $0xcc] ss:$16 sps:$4 sm:$0xff]   ;;  %v2326_v51 = vld [vmem:[#allocation5 + $0xc0] ss:$16 sps:$4 sm:$0xff]  }
 0x7d5   :  { %1617 = vmatprep.mubr.bf16.mxu1 %v3159_v3  ;;  %1658 = vmatprep.mubr.bf16.mxu0 %v3159_v3  ;;  %v2318_v3 = vld [vmem:[#allocation5 + $0x80] ss:$16 sps:$4 sm:$0xff]  }
 0x7d7   :  { %1588 = vmatpush1.bf16.msra.mxu1 %v3013_v45  ;;  %1629 = vmatpush1.bf16.msra.mxu0 %v3016_v56  ;;  %v2327_v45 = vld [vmem:[#allocation5 + $0xc8] ss:$16 sps:$4 sm:$0xff]   ;;  %v2328_v56 = vld [vmem:[#allocation5 + $0xe4] ss:$16 sps:$4 sm:$0xff]  }
 0x7d8   :  { %1589 = vmatprep.subr.bf16.mxu1 %v3019_v63  ;;  %1630 = vmatprep.subr.bf16.mxu0 %v3022_v1  ;;  %v2329_v63 = vld [vmem:[#allocation5 + $0xec] ss:$16 sps:$4 sm:$0xff]   ;;  %v2330_v1 = vld [vmem:[#allocation5 + $0xe0] ss:$16 sps:$4 sm:$0xff]  }
 0x7db   :  { %1590 = vmatpush1.bf16.msra.mxu1 %v3025_v14  ;;  %1631 = vmatpush1.bf16.msra.mxu0 %v3028_v4  ;;  %v2331_v14 = vld [vmem:[#allocation5 + $0xe8] ss:$16 sps:$4 sm:$0xff]   ;;  %v2164_v4 = vld [vmem:[#allocation7] sm:$0xff]  }
 0x7dc   :  { %1591 = vmatprep.subr.bf16.mxu1 %v3031_v5  ;;  %1632 = vmatprep.subr.bf16.mxu0 %v3034_v7 }
 0x7df   :  { %1592 = vmatpush1.bf16.msra.mxu1 %v3037_v8  ;;  %1633 = vmatpush1.bf16.msra.mxu0 %v3040_v9  ;;  %v3170_v8 = vld [vmem:[#allocation22_spill] sm:$0xff] }
 0x7e0   :  { %1593 = vmatprep.subr.bf16.mxu1 %v3043_v10  ;;  %1634 = vmatprep.subr.bf16.mxu0 %v3046_v12  ;;  %v3171_v10 = vld [vmem:[#allocation23_spill] sm:$0xff] }
 0x7e3   :  { %1594 = vmatpush1.bf16.msra.mxu1 %v2318_v3  ;;  %1635 = vmatpush1.bf16.msra.mxu0 %v2319_v55  ;;  %v1697_v3 = vpack.c.bf16 %v3071_v44, %v2995_v2 }
 0x7e4   :  { %1595 = vmatprep.subr.bf16.mxu1 %v2320_v47  ;;  %1636 = vmatprep.subr.bf16.mxu0 %v2321_v52 }
 0x7e7   :  { %1596 = vmatpush1.bf16.msra.mxu1 %v2322_v32  ;;  %1637 = vmatpush1.bf16.msra.mxu0 %v2323_v58  ;;  %v3174_v32 = vld [vmem:[#allocation26_spill] sm:$0xff] }
 0x7e8   :  { %1597 = vmatprep.subr.bf16.mxu1 %v2324_v53  ;;  %1638 = vmatprep.subr.bf16.mxu0 %v2325_v42 }
 0x7eb   :  { %1598 = vmatpush1.bf16.msra.mxu1 %v2326_v51  ;;  %1639 = vmatpush1.bf16.msra.mxu0 %v2327_v45  ;;  %v3175_v51 = vld [vmem:[#allocation27_spill] sm:$0xff] }
 0x7ec   :  { %1599 = vmatprep.subr.bf16.mxu1 %v2328_v56  ;;  %1640 = vmatprep.subr.bf16.mxu0 %v2329_v63  ;;  %v3176_v56 = vld [vmem:[#allocation28_spill] sm:$0xff] }
 0x7ef   :  { %1600 = vmatpush1.bf16.msra.mxu1 %v2330_v1  ;;  %1641 = vmatpush1.bf16.msra.mxu0 %v2331_v14 }
 0x7f0   :  { %2022 = vmatprep.subr.bf16.mxu1 %v2164_v4 }
 0x8a5   :  { %v1508_v5 = vpop.f32.mrb[40].mxu1  ;;  %v1549_v7 = vpop.f32.mrb[48].mxu0 }
 0x8a6   :  { %v1556_v9 = vadd.f32 %v1508_v5, %v3170_v8  ;;  %v1558_v12 = vadd.f32 %v1549_v7, %v3171_v10  ;;  %v1510_v27 = vpop.f32.mrb[41].mxu1  ;;  %v1551_v28 = vpop.f32.mrb[49].mxu0 }
 0x8a7   :  { %v1557_v30 = vadd.f32 %v1510_v27, %v3172_v29  ;;  %v1559_v33 = vadd.f32 %v1551_v28, %v3173_v31  ;;  %v1512_v34 = vpop.f32.mrb[42].mxu1  ;;  %v1553_v35 = vpop.f32.mrb[50].mxu0  ;;  %v1965_v31 = vld [vmem:[%s3138_s6] ss:$0 sm:$0xff]  ;;  %s2435_s6 = smov [#allocation8]  }
 0x8a8   :  { %v1959_v36 = vmul.f32 -1.442695, %v1556_v9  ;;  %v1513_v37 = vpop.f32.mrb[43].mxu1  ;;  %v1554_v13 = vpop.f32.mrb[51].mxu0  ;;  %s1848_s22 = sshll.u32 %s2435_s6, 4  ;;  %s1849_s22 = int_to_ptr.vmem [resolvable:$true] %s1848_s22 }
 0x8a9   :  { %v1960_v38 = vmul.f32 -1.442695, %v1557_v30  ;;  %v1961_v18 = vmul.f32 -1.442695, %v1559_v33  ;;  %s2398_s23 = scalar_lea.vmem %s1849_s22, 1024  ;;  %p2403_p11 = scmp.lt.s32.totalorder %s1849_s22, %s1849_s22 }
 0x8aa   :  { %2268 = vpow2.f32 %v1959_v36  ;;  %p2399_p10 = scmp.ne.s32.totalorder %s1849_s22, %s2398_s23  ;;  %p2404_p12 = scmp.lt.s32.totalorder %s2398_s23, %s2398_s23 }
 0x8ab   :  { %2270 = vpow2.f32 %v1960_v38 }
 0x8ac   :  { %2272 = vpow2.f32 %v1961_v18  ;;  %p2405_p13 = por %p2404_p12, %p2403_p11 }
 0x8ad   :  { %2274 = vtanh.f32 %v1558_v12 }
 0x8ae   :  { %p2406_p0 = pnand %p2405_p13, %p2399_p10 }
 0x8b4   :  { %v2269_v39 = vpop.eup %2268 }
 0x8b5   :  { %v2271_v19 = vpop.eup %2270  ;;  %v1563_v40 = vadd.f32 1.0, %v2269_v39 }
 0x8b6   :  { %v1569_v21 = vadd.f32 1.0, %v2271_v19  ;;  %v2273_v41 = vpop.eup %2272 }
 0x8b7   :  { %2276 = vrcp.f32 %v1563_v40  ;;  %v2275_v22 = vpop.eup %2274  ;;  %v1576_v26 = vadd.f32 1.0, %v2273_v41 }
 0x8b8   :  { %2278 = vrcp.f32 %v1569_v21 }
 0x8b9   :  { %2280 = vrcp.f32 %v1576_v26 }
 0x8c1   :  { %v2277_v23 = vpop.eup %2276 }
 0x8c2   :  { %v2279_v24 = vpop.eup %2278  ;;  %v1580_v25 = vmul.f32 %v2277_v23, %v2275_v22 }
 0x8c3   :  { %v1579_v20 = vmul.f32 %v2279_v24, %v3068_v17  ;;  %v2281_v61 = vpop.eup %2280  ;;  %v2167_v17 = vld [vmem:[#allocation7 + $0x18] sm:$0xff]  }
 0x8c5   :  { %v3098_v60 = vadd.f32 %v1580_v25, %v1579_v20 }
 0x8c7   :  { %2282 = vtanh.f32 %v3098_v60 }
 0x8d1   :  { %v2283_v15 = vpop.eup %2282 }
 0x8d2   :  { %v3101_v11 = vmul.f32 %v2283_v15, %v2281_v61 }
 0x8d4   :  { %v1584_v49 = vpack.c.bf16 %v3101_v11, %v3101_v11 }
 0x8d6   :  { %1618 = vmatmul.mubr.bf16.vlgmr.msra.gmra.mrb[44].mxu1 %v1584_v49  ;;  %1659 = vmatmul.mubr.bf16.vlgmr.msra.gmra.mrb[52].mxu0 %v1584_v49 }
 0x8d7   :  { %2023 = vmatpush3.bf16.msra.mxu1 %v2164_v4  ;;  %2038 = vmatprep.mubr.bf16.mxu1 %v1695_v50 }
 0x8d8   :  { %2024 = vmatprep.subr.bf16.mxu1 %v2165_v59 }
 0x8db   :  { %2025 = vmatpush3.bf16.msra.mxu1 %v2165_v59 }
 0x8dc   :  { %2026 = vmatprep.subr.bf16.mxu1 %v2166_v16 }
 0x8df   :  { %2027 = vmatpush3.bf16.msra.mxu1 %v2166_v16 }
 0x8e0   :  { %2028 = vmatprep.subr.bf16.mxu1 %v2167_v17 }
 0x8e3   :  { %2029 = vmatpush3.bf16.msra.mxu1 %v2167_v17 }
 0x8e4   :  { %2030 = vmatprep.subr.bf16.mxu1 %v2168_v43 }
 0x8e7   :  { %2031 = vmatpush3.bf16.msra.mxu1 %v2168_v43 }
 0x8e8   :  { %2032 = vmatprep.subr.bf16.mxu1 %v2169_v0 }
 0x8eb   :  { %2033 = vmatpush3.bf16.msra.mxu1 %v2169_v0 }
 0x8ec   :  { %2034 = vmatprep.subr.bf16.mxu1 %v2170_v54 }
 0x8ef   :  { %2035 = vmatpush3.bf16.msra.mxu1 %v2170_v54 }
 0x8f0   :  { %2036 = vmatprep.subr.bf16.mxu1 %v2171_v48 }
 0x8f3   :  { %2037 = vmatpush3.bf16.msra.mxu1 %v2171_v48 }
 0x8f6   :  { %2039 = vmatmul.mubr.bf16.vlgmr.msra.gmra.mrb[48].mxu1 %v1696_v57 }
 0x8f7   :  { %2042 = vmatprep.mubr.bf16.mxu1 %v1697_v3 }
 0x9a9   :  { %v1619_v55 = vpop.f32.mrb[44].mxu1  ;;  %v1660_v47 = vpop.f32.mrb[52].mxu0 }
 0x9aa   :  { %v1667_v52 = vadd.f32 %v1619_v55, %v2794_v62  ;;  %v1669_v58 = vadd.f32 %v1660_v47, %v3174_v32  ;;  %v1621_v53 = vpop.f32.mrb[45].mxu1  ;;  %v1662_v42 = vpop.f32.mrb[53].mxu0 }
 0x9ab   :  { %v1668_v45 = vadd.f32 %v1621_v53, %v3175_v51  ;;  %v1670_v63 = vadd.f32 %v1662_v42, %v3176_v56  ;;  %v1623_v1 = vpop.f32.mrb[46].mxu1  ;;  %v1664_v14 = vpop.f32.mrb[54].mxu0 }
 0x9ac   :  { %v1962_v46 = vmul.f32 -1.442695, %v1667_v52  ;;  %v1624_v6 = vpop.f32.mrb[47].mxu1  ;;  %v1665_v4 = vpop.f32.mrb[55].mxu0 }
 0x9ad   :  { %v1963_v2 = vmul.f32 -1.442695, %v1668_v45  ;;  %v1964_v44 = vmul.f32 -1.442695, %v1670_v63 }
 0x9ae   :  { %2284 = vpow2.f32 %v1962_v46 }
 0x9af   :  { %2286 = vpow2.f32 %v1963_v2 }
 0x9b0   :  { %2288 = vpow2.f32 %v1964_v44 }
 0x9b1   :  { %2290 = vtanh.f32 %v1669_v58 }
 0x9b8   :  { %v2285_v5 = vpop.eup %2284 }
 0x9b9   :  { %v2287_v7 = vpop.eup %2286  ;;  %v1674_v62 = vadd.f32 1.0, %v2285_v5 }
 0x9ba   :  { %v1680_v8 = vadd.f32 1.0, %v2287_v7  ;;  %v2289_v9 = vpop.eup %2288 }
 0x9bb   :  { %2292 = vrcp.f32 %v1674_v62  ;;  %v2291_v10 = vpop.eup %2290  ;;  %v1687_v29 = vadd.f32 1.0, %v2289_v9 }
 0x9bc   :  { %2294 = vrcp.f32 %v1680_v8 }
 0x9bd   :  { %2296 = vrcp.f32 %v1687_v29 }
 0x9c5   :  { %v2293_v12 = vpop.eup %2292 }
 0x9c6   :  { %v2295_v27 = vpop.eup %2294  ;;  %v1691_v28 = vmul.f32 %v2293_v12, %v2291_v10 }
 0x9c7   :  { %v1690_v30 = vmul.f32 %v2295_v27, %v3098_v60  ;;  %v2297_v19 = vpop.eup %2296 }
 0x9c9   :  { %v2040_v33 = vpop.f32.mrb[48].mxu1  ;;  %v1692_v34 = vadd.f32 %v1691_v28, %v1690_v30 }
 0x9ca   :  { %v1813_v35 = vadd.f32 %v2040_v33, %v1965_v31  ;;  %v1804_v36 = vpop.f32.mrb[49].mxu1 }
 0x9cb   :  { %v1805_v37 = vadd.f32 %v1965_v31, %v1804_v36  ;;  %v2041_v13 = vpop.f32.mrb[50].mxu1  ;;  %2298 = vtanh.f32 %v1692_v34 }
 0x9cc   :  { %1837 = vst [vmem:[#allocation8 + $0x10] sm:$0xff] %v1813_v35  ;;  %v1816_v38 = vadd.f32 %v2041_v13, %v1965_v31  ;;  %v1807_v18 = vpop.f32.mrb[51].mxu1 }
 0x9cd   :  { %1835 = vst [vmem:[#allocation8] sm:$0xff] %v1805_v37  ;;  %v1808_v39 = vadd.f32 %v1965_v31, %v1807_v18 }
 0x9ce   :  { %1838 = vst [vmem:[#allocation8 + $0x18] sm:$0xff] %v1816_v38 }
 0x9cf   :  { %1836 = vst [vmem:[#allocation8 + $0x8] sm:$0xff] %v1808_v39 }
 0x9d5   :  { %v2299_v40 = vpop.eup %2298 }
 0x9d6   :  { %v1694_v21 = vmul.f32 %v2299_v40, %v2297_v19 }
 0x9d8   :  { %v1698_v41 = vpack.c.bf16 %v1694_v21, %v3101_v11 }
 0x9da   :  { %2043 = vmatmul.mubr.bf16.gmra.mrb[52].mxu1 %v1698_v41 }
 0xaad   :  { %v2044_v22 = vpop.f32.mrb[52].mxu1 }
 0xaae   :  { %v1829_v23 = vadd.f32 %v2044_v22, %v1965_v31  ;;  %v1820_v24 = vpop.f32.mrb[53].mxu1 }
 0xaaf   :  { %v1821_v25 = vadd.f32 %v1965_v31, %v1820_v24  ;;  %v2045_v26 = vpop.f32.mrb[54].mxu1 }
 0xab0   :  { %1841 = vst [vmem:[#allocation8 + $0x30] sm:$0xff] %v1829_v23  ;;  %v1832_v20 = vadd.f32 %v2045_v26, %v1965_v31  ;;  %v1823_v60 = vpop.f32.mrb[55].mxu1 }
 0xab1   :  { %1839 = vst [vmem:[#allocation8 + $0x20] sm:$0xff] %v1821_v25  ;;  %v1824_v61 = vadd.f32 %v1965_v31, %v1823_v60 }
 0xab2   :  { %1842 = vst [vmem:[#allocation8 + $0x38] sm:$0xff] %v1832_v20 }
 0xab3   :  { %1840 = vst [vmem:[#allocation8 + $0x28] sm:$0xff] %v1824_v61 }
 0xab4   :  { %2409 = shalt.err (!%p2406_p0)
}
 0xab5   :  { %s2410_s25 = scalar_lea.hbm %s3139_s7, 1024 }
 0xab6   :  { %p2411_p1 = scmp.ne.s32.totalorder %s3139_s7, %s2410_s25  ;;  %p2414_p2 = scmp.lt.u32.totalorder %s2410_s25, %s3139_s7 }
 0xab8   :  { %p2416_p3 = pnand %p2414_p2, %p2411_p1 }
 0xaba   :  { %2419 = shalt.err (!%p2416_p3)
}
 0xabb   :  { %s2436_s8 = smov 128   ;;  %s2437_s9 = smov 8  }
 0xabc   :  { %1854 = dma.vmem_to_hbm [thread:$0]  %s1849_s22, 1024, %s3139_s7, [#allocation4], %s2436_s8, %s2436_s8, %s2437_s9  }
 0xabd   :  { %2424 = dma.done.wait [#allocation4], 1024  }
 0xabe   :  { %2425 = vsyncadd [#allocation4], 4294966272 }
 0xabf   :  { %1858 = vsyncpa [#allocation3], 1 }
 0xac0   :  { %1859 = vsyncpa [#allocation6], 1 }
 0xac1   :  { %1860 = vsyncpa [#allocation4], 1 }

</bundles_post_ra>
